<compile_context>
chip_gen: v7x
topology: tpu7x:2x2x1
jax: 0.10.0
libtpu: 0.0.40
codegen_flags: <defaults>
</compile_context>

<pallas_src>
import functools

import jax
import jax.numpy as jnp
from jax.experimental import pallas as pl
from jax.experimental.pallas import tpu as pltpu


# ----------------------------------------------------------------------------- helpers

def _full_spec(shape):
    """BlockSpec covering a whole (weight) array, for a 1-D grid over the batch."""
    nd = len(shape)
    return pl.BlockSpec(shape, lambda b, _nd=nd: (0,) * _nd)


def _layernorm(x, g, b, eps=1e-5):
    mu = jnp.mean(x, axis=-1, keepdims=True)
    var = jnp.mean((x - mu) ** 2, axis=-1, keepdims=True)
    return (x - mu) * jax.lax.rsqrt(var + eps) * g + b


_WEIGHT_ORDER = (
    "w_emb", "b_emb", "pe",
    "wq", "bq", "wk", "bk", "wv", "bv", "wo", "bo",
    "g1", "be1", "w1", "b1", "w2", "b2", "g2", "be2",
    "ws1", "bs1", "ws2", "bs2", "wch_t", "bch_col", "wout", "bout",
    "war", "bar",
)


# ----------------------------------------------------------------------------- fused kernel

def fused_forward_kernel(x_ref,
                         w_emb, b_emb, pe,
                         wq, bq, wk, bk, wv, bv, wo, bo,
                         g1, be1, w1, b1, w2, b2, g2, be2,
                         ws1, bs1, ws2, bs2, wch_t, bch_col, wout, bout,
                         war, bar,
                         o_ref, *, n_heads, n_layers):
    # One grid step == one batch element; everything below stays on-chip.
    f32 = jnp.float32

    xt = x_ref[0].T                                                   # (N, T) == x[b].permute(1,0)

    # ---- DataEmbedding: per-variable Linear(T -> D) + learned positional encoding ---------
    h = (jnp.dot(xt, w_emb[...], preferred_element_type=f32)
         + b_emb[...] + pe[...])                                      # (N, D)

    N, D = h.shape
    hd = D // n_heads
    scale = 1.0 / float(hd) ** 0.5

    # ---- Base_Encoder: n_layers of post-norm MHA + GELU FFN --------------------------------
    for l in range(n_layers):
        xb = jnp.broadcast_to(h[None], (n_heads, N, D))               # (H, N, D)

        # Per-head projections as batched matmuls (weights pre-split per head in the wrapper)
        # instead of 4 tiny sliced dots + lane concatenation.
        qh = jnp.einsum('hnd,hdf->hnf', xb, wq[l], preferred_element_type=f32) + bq[l]
        kh = jnp.einsum('hnd,hdf->hnf', xb, wk[l], preferred_element_type=f32) + bk[l]
        vh = jnp.einsum('hnd,hdf->hnf', xb, wv[l], preferred_element_type=f32) + bv[l]

        s = jnp.einsum('hqf,hkf->hqk', qh, kh, preferred_element_type=f32) * scale
        s = s - jnp.max(s, axis=-1, keepdims=True)
        p = jnp.exp(s)
        p = p * pl.reciprocal(jnp.sum(p, axis=-1, keepdims=True), approx=True)

        oh = jnp.einsum('hqk,hkf->hqf', p, vh, preferred_element_type=f32)        # (H, N, hd)
        attn = jnp.sum(jnp.einsum('hqf,hfd->hqd', oh, wo[l],
                                  preferred_element_type=f32), axis=0) + bo[l]     # (N, D)

        y = _layernorm(h + attn, g1[l], be1[l])

        ff = jnp.dot(y, w1[l], preferred_element_type=f32) + b1[l]
        ff = jax.nn.gelu(ff)                                          # tanh-approx GELU (EUP)
        ff = jnp.dot(ff, w2[l], preferred_element_type=f32) + b2[l]

        h = _layernorm(y + ff, g2[l], be2[l])

    # ---- IEBlock (transpose-free form) + AR highway -----------------------------------------
    a = jnp.dot(h, ws1[...], preferred_element_type=f32) + bs1[...]   # (N, hid)
    a = jnp.where(a > 0, a, 0.01 * a)                                 # LeakyReLU(0.01)
    a = jnp.dot(a, ws2[...], preferred_element_type=f32) + bs2[...]   # (N, hid//4)
    # (a.T @ wch + bch).T == wch.T @ a + bch_col : both in-kernel transposes removed.
    c = a + jnp.dot(wch_t[...], a, preferred_element_type=f32) + bch_col[...]
    o = jnp.dot(c, wout[...], preferred_element_type=f32) + bout[...]              # (N, L)

    hw = jnp.dot(xt, war[...], preferred_element_type=f32) + bar[...]              # (N, L)

    o_ref[0] = o + hw                                                 # (N, L)


def fused_forward_call(x, fp, *, n_heads, n_layers):
    B, T, N = x.shape
    L = fp["wout"].shape[1]
    weights = [fp[k] for k in _WEIGHT_ORDER]
    in_specs = [pl.BlockSpec((1, T, N), lambda b: (b, 0, 0))]
    in_specs += [_full_spec(w.shape) for w in weights]
    kern = functools.partial(fused_forward_kernel, n_heads=n_heads, n_layers=n_layers)
    return pl.pallas_call(
        kern,
        out_shape=jax.ShapeDtypeStruct((B, N, L), jnp.float32),
        grid=(B,),
        in_specs=in_specs,
        out_specs=pl.BlockSpec((1, N, L), lambda b: (b, 0, 0)),
        compiler_params=pltpu.CompilerParams(dimension_semantics=("parallel",)),
    )(x, *weights)


# ----------------------------------------------------------------------------- param re-packing

def prepare_fused_params(params, *, n_heads):
    """Re-pack per-module parameters into the layout the fused kernel consumes.

    - QKV / output-projection weights pre-split per head (no in-kernel reshapes).
    - Per-layer tensors stacked along a leading layer axis (one ref per tensor kind).
    - IEBlock channel projection algebraically transposed (removes two in-kernel transposes).
    - Eval-mode BatchNorm1d folded into the head Linear; the head weight is permuted to match the
      kernel's (variable, horizon) flattening order so no transpose is needed before the head.
    """
    emb = params["emb"]
    layers = params["layers"]
    D = emb["w"].shape[1]
    hd = D // n_heads

    def split_cols(w):     # (D, D) -> (H, D, hd)
        return w.reshape(D, n_heads, hd).transpose(1, 0, 2)

    def split_bias(b):     # (1, D) -> (H, 1, hd)
        return b.reshape(1, n_heads, hd).transpose(1, 0, 2)

    fp = {"w_emb": emb["w"], "b_emb": emb["b"], "pe": emb["pe"]}

    fp["wq"] = jnp.stack([split_cols(lp["wq"]) for lp in layers])
    fp["bq"] = jnp.stack([split_bias(lp["bq"]) for lp in layers])
    fp["wk"] = jnp.stack([split_cols(lp["wk"]) for lp in layers])
    fp["bk"] = jnp.stack([split_bias(lp["bk"]) for lp in layers])
    fp["wv"] = jnp.stack([split_cols(lp["wv"]) for lp in layers])
    fp["bv"] = jnp.stack([split_bias(lp["bv"]) for lp in layers])
    fp["wo"] = jnp.stack([lp["wo"].reshape(n_heads, hd, D) for lp in layers])
    fp["bo"] = jnp.stack([lp["bo"] for lp in layers])
    for k in ("g1", "be1", "w1", "b1", "w2", "b2", "g2", "be2"):
        fp[k] = jnp.stack([lp[k] for lp in layers])

    ie = params["ie"]
    fp["ws1"], fp["bs1"] = ie["ws1"], ie["bs1"]
    fp["ws2"], fp["bs2"] = ie["ws2"], ie["bs2"]
    fp["wch_t"] = ie["wch"].T
    fp["bch_col"] = ie["bch"].reshape(-1, 1)
    fp["wout"], fp["bout"] = ie["wout"], ie["bout"]
    fp["war"], fp["bar"] = ie["war"], ie["bar"]

    # BN(eval) folded into the head Linear; weight permuted for (n, l) flattening order.
    hp = params["head"]
    L = ie["wout"].shape[1]
    N = emb["pe"].shape[0]
    C = hp["w"].shape[1]
    bn_scale = hp["gamma"] * jax.lax.rsqrt(hp["rvar"] + 1e-5)              # (1, F)
    w_fold = hp["w"] * bn_scale.reshape(-1, 1)                             # (F, C)
    b_fold = hp["b"] + (hp["beta"] - hp["rmean"] * bn_scale) @ hp["w"]     # (1, C)
    w_perm = w_fold.reshape(L, N, C).transpose(1, 0, 2).reshape(N * L, C)  # match (n,l) flatten
    head = {"w": w_perm, "b": b_fold}
    return fp, head


# ----------------------------------------------------------------------------- full forward

def basic_transformer_forward(x, params, *, n_heads):
    B, T, N = x.shape
    n_layers = len(params["layers"])
    fp, head = prepare_fused_params(params, n_heads=n_heads)

    out_nl = fused_forward_call(x, fp, n_heads=n_heads, n_layers=n_layers)   # (B, N, L)

    # Flatten in (variable, horizon) order; head weight was permuted to match, so this equals
    # torch.flatten(out.permute(0,2,1), 1) followed by BN(eval)+Linear, with no transpose here.
    flat = out_nl.reshape(B, -1)
    # TODO(synk): `self.smax` is never defined in __init__; logits returned without softmax.
    return flat @ head["w"] + head["b"]                                      # (B, num_classes)


# ----------------------------------------------------------------------------- pure-JAX reference

def reference_forward(x, params, *, n_heads):
    """Straightforward (un-fused, un-transformed) reference of the same forward pass."""
    B, T, N = x.shape
    xp = jnp.transpose(x, (0, 2, 1))                                          # (B, N, T)
    e = params["emb"]
    h = xp @ e["w"] + e["b"] + e["pe"]                                        # (B, N, D)
    D = h.shape[-1]
    hd = D // n_heads
    scale = 1.0 / float(hd) ** 0.5
    for lp in params["layers"]:
        q = h @ lp["wq"] + lp["bq"]
        k = h @ lp["wk"] + lp["bk"]
        v = h @ lp["wv"] + lp["bv"]
        heads = []
        for i in range(n_heads):
            sl = slice(i * hd, (i + 1) * hd)
            s = jnp.einsum('bqd,bkd->bqk', q[..., sl], k[..., sl]) * scale
            p = jax.nn.softmax(s, axis=-1)
            heads.append(jnp.einsum('bqk,bkd->bqd', p, v[..., sl]))
        attn = jnp.concatenate(heads, axis=-1) @ lp["wo"] + lp["bo"]
        y = _layernorm(h + attn, lp["g1"], lp["be1"])
        ff = jax.nn.gelu(y @ lp["w1"] + lp["b1"]) @ lp["w2"] + lp["b2"]
        h = _layernorm(y + ff, lp["g2"], lp["be2"])
    ip = params["ie"]
    a = h @ ip["ws1"] + ip["bs1"]
    a = jnp.where(a > 0, a, 0.01 * a)
    a = a @ ip["ws2"] + ip["bs2"]                                             # (B, N, hid4)
    at = jnp.swapaxes(a, 1, 2)                                                # (B, hid4, N)
    c = at + at @ ip["wch"] + ip["bch"]
    o = jnp.swapaxes(c, 1, 2) @ ip["wout"] + ip["bout"]                       # (B, N, L)
    hw = xp @ ip["war"] + ip["bar"]                                           # (B, N, L)
    out = jnp.swapaxes(o + hw, 1, 2)                                          # (B, L, N)
    flat = out.reshape(B, -1)
    hp = params["head"]
    xn = (flat - hp["rmean"]) * jax.lax.rsqrt(hp["rvar"] + 1e-5) * hp["gamma"] + hp["beta"]
    return xn @ hp["w"] + hp["b"]


# ----------------------------------------------------------------------------- parameters

def init_params(key, T, N, L, D, d_ff, n_heads, n_layers, num_classes):
    keys = iter(jax.random.split(key, 128))

    def w(shape, scale=0.02):
        return (scale * jax.random.normal(next(keys), shape)).astype(jnp.float32)

    def zeros(shape):
        return jnp.zeros(shape, jnp.float32)

    params = {}
    params["emb"] = {"w": w((T, D)), "b": zeros((1, D)), "pe": w((N, D))}

    layers = []
    for _ in range(n_layers):
        layers.append({
            "wq": w((D, D)), "bq": zeros((1, D)),
            "wk": w((D, D)), "bk": zeros((1, D)),
            "wv": w((D, D)), "bv": zeros((1, D)),
            "wo": w((D, D)), "bo": zeros((1, D)),
            "g1": jnp.ones((1, D), jnp.float32), "be1": zeros((1, D)),
            "w1": w((D, d_ff)), "b1": zeros((1, d_ff)),
            "w2": w((d_ff, D)), "b2": zeros((1, D)),
            "g2": jnp.ones((1, D), jnp.float32), "be2": zeros((1, D)),
        })
    params["layers"] = layers

    hid = D               # IEBlock hid_dim = d_model
    hid4 = hid // 4
    params["ie"] = {
        "ws1": w((D, hid)), "bs1": zeros((1, hid)),
        "ws2": w((hid, hid4)), "bs2": zeros((1, hid4)),
        "wch": jnp.eye(N, dtype=jnp.float32),            # torch.nn.init.eye_ on channel_proj
        "bch": w((1, N)),
        "wout": w((hid4, L)), "bout": zeros((1, L)),
        "war": w((T, L)), "bar": zeros((1, L)),          # self.ar = nn.Linear(lookback, lookahead)
    }

    F = L * N
    params["head"] = {
        "gamma": jnp.ones((1, F), jnp.float32), "beta": zeros((1, F)),
        "rmean": zeros((1, F)), "rvar": jnp.ones((1, F), jnp.float32),
        "w": w((F, num_classes)), "b": zeros((1, num_classes)),
    }
    return params


# ----------------------------------------------------------------------------- main

if __name__ == "__main__":
    # small config: lookback T=16, n_vars N=4, lookahead L=8, d_model=32, d_ff=64,
    #               n_heads=4, e_layers=2, num_classes=3
    B, T, N = 2, 16, 4
    L, D, d_ff, n_heads, n_layers, num_classes = 8, 32, 64, 4, 2, 3

    key = jax.random.PRNGKey(0)
    kx, kp = jax.random.split(key)
    x = jax.random.normal(kx, (B, T, N), dtype=jnp.float32)
    params = init_params(kp, T, N, L, D, d_ff, n_heads, n_layers, num_classes)

    fwd = jax.jit(functools.partial(basic_transformer_forward, n_heads=n_heads))
    out = jax.block_until_ready(fwd(x, params))

    assert out.shape == (B, num_classes), out.shape
    assert bool(jnp.all(jnp.isfinite(out)))

    ref = jax.block_until_ready(reference_forward(x, params, n_heads=n_heads))
    assert bool(jnp.allclose(out, ref, rtol=3e-2, atol=3e-3)), (out, ref)

    print("KERNEL_OK")
</pallas_src>

<mosaic_0001>
module attributes {stable_mosaic.version = 11 : i64} {
  func.func @fused_forward_kernel(%arg0: i32, %arg1: memref<1x16x4xf32, #tpu.memory_space<vmem>>, %arg2: memref<16x32xf32, #tpu.memory_space<vmem>>, %arg3: memref<1x32xf32, #tpu.memory_space<vmem>>, %arg4: memref<4x32xf32, #tpu.memory_space<vmem>>, %arg5: memref<2x4x32x8xf32, #tpu.memory_space<vmem>>, %arg6: memref<2x4x1x8xf32, #tpu.memory_space<vmem>>, %arg7: memref<2x4x32x8xf32, #tpu.memory_space<vmem>>, %arg8: memref<2x4x1x8xf32, #tpu.memory_space<vmem>>, %arg9: memref<2x4x32x8xf32, #tpu.memory_space<vmem>>, %arg10: memref<2x4x1x8xf32, #tpu.memory_space<vmem>>, %arg11: memref<2x4x8x32xf32, #tpu.memory_space<vmem>>, %arg12: memref<2x1x32xf32, #tpu.memory_space<vmem>>, %arg13: memref<2x1x32xf32, #tpu.memory_space<vmem>>, %arg14: memref<2x1x32xf32, #tpu.memory_space<vmem>>, %arg15: memref<2x32x64xf32, #tpu.memory_space<vmem>>, %arg16: memref<2x1x64xf32, #tpu.memory_space<vmem>>, %arg17: memref<2x64x32xf32, #tpu.memory_space<vmem>>, %arg18: memref<2x1x32xf32, #tpu.memory_space<vmem>>, %arg19: memref<2x1x32xf32, #tpu.memory_space<vmem>>, %arg20: memref<2x1x32xf32, #tpu.memory_space<vmem>>, %arg21: memref<32x32xf32, #tpu.memory_space<vmem>>, %arg22: memref<1x32xf32, #tpu.memory_space<vmem>>, %arg23: memref<32x8xf32, #tpu.memory_space<vmem>>, %arg24: memref<1x8xf32, #tpu.memory_space<vmem>>, %arg25: memref<4x4xf32, #tpu.memory_space<vmem>>, %arg26: memref<4x1xf32, #tpu.memory_space<vmem>>, %arg27: memref<8x8xf32, #tpu.memory_space<vmem>>, %arg28: memref<1x8xf32, #tpu.memory_space<vmem>>, %arg29: memref<16x8xf32, #tpu.memory_space<vmem>>, %arg30: memref<1x8xf32, #tpu.memory_space<vmem>>, %arg31: memref<1x4x8xf32, #tpu.memory_space<vmem>>) attributes {dimension_semantics = [#tpu.dimension_semantics<parallel>], iteration_bounds = array<i64: 2>, scalar_prefetch = 0 : i64, scratch_operands = 0 : i64, tpu.core_type = #tpu.core_type<tc>, window_params = [{transform_indices = @transform_0, window_bounds = array<i64: 1, 16, 4>}, {pipeline_mode = #tpu.pipeline_mode<synchronous>, transform_indices = @transform_1, window_bounds = array<i64: 16, 32>}, {pipeline_mode = #tpu.pipeline_mode<synchronous>, transform_indices = @transform_2, window_bounds = array<i64: 1, 32>}, {pipeline_mode = #tpu.pipeline_mode<synchronous>, transform_indices = @transform_3, window_bounds = array<i64: 4, 32>}, {pipeline_mode = #tpu.pipeline_mode<synchronous>, transform_indices = @transform_4, window_bounds = array<i64: 2, 4, 32, 8>}, {pipeline_mode = #tpu.pipeline_mode<synchronous>, transform_indices = @transform_5, window_bounds = array<i64: 2, 4, 1, 8>}, {pipeline_mode = #tpu.pipeline_mode<synchronous>, transform_indices = @transform_6, window_bounds = array<i64: 2, 4, 32, 8>}, {pipeline_mode = #tpu.pipeline_mode<synchronous>, transform_indices = @transform_7, window_bounds = array<i64: 2, 4, 1, 8>}, {pipeline_mode = #tpu.pipeline_mode<synchronous>, transform_indices = @transform_8, window_bounds = array<i64: 2, 4, 32, 8>}, {pipeline_mode = #tpu.pipeline_mode<synchronous>, transform_indices = @transform_9, window_bounds = array<i64: 2, 4, 1, 8>}, {pipeline_mode = #tpu.pipeline_mode<synchronous>, transform_indices = @transform_10, window_bounds = array<i64: 2, 4, 8, 32>}, {pipeline_mode = #tpu.pipeline_mode<synchronous>, transform_indices = @transform_11, window_bounds = array<i64: 2, 1, 32>}, {pipeline_mode = #tpu.pipeline_mode<synchronous>, transform_indices = @transform_12, window_bounds = array<i64: 2, 1, 32>}, {pipeline_mode = #tpu.pipeline_mode<synchronous>, transform_indices = @transform_13, window_bounds = array<i64: 2, 1, 32>}, {pipeline_mode = #tpu.pipeline_mode<synchronous>, transform_indices = @transform_14, window_bounds = array<i64: 2, 32, 64>}, {pipeline_mode = #tpu.pipeline_mode<synchronous>, transform_indices = @transform_15, window_bounds = array<i64: 2, 1, 64>}, {pipeline_mode = #tpu.pipeline_mode<synchronous>, transform_indices = @transform_16, window_bounds = array<i64: 2, 64, 32>}, {pipeline_mode = #tpu.pipeline_mode<synchronous>, transform_indices = @transform_17, window_bounds = array<i64: 2, 1, 32>}, {pipeline_mode = #tpu.pipeline_mode<synchronous>, transform_indices = @transform_18, window_bounds = array<i64: 2, 1, 32>}, {pipeline_mode = #tpu.pipeline_mode<synchronous>, transform_indices = @transform_19, window_bounds = array<i64: 2, 1, 32>}, {pipeline_mode = #tpu.pipeline_mode<synchronous>, transform_indices = @transform_20, window_bounds = array<i64: 32, 32>}, {pipeline_mode = #tpu.pipeline_mode<synchronous>, transform_indices = @transform_21, window_bounds = array<i64: 1, 32>}, {pipeline_mode = #tpu.pipeline_mode<synchronous>, transform_indices = @transform_22, window_bounds = array<i64: 32, 8>}, {pipeline_mode = #tpu.pipeline_mode<synchronous>, transform_indices = @transform_23, window_bounds = array<i64: 1, 8>}, {pipeline_mode = #tpu.pipeline_mode<synchronous>, transform_indices = @transform_24, window_bounds = array<i64: 4, 4>}, {pipeline_mode = #tpu.pipeline_mode<synchronous>, transform_indices = @transform_25, window_bounds = array<i64: 4, 1>}, {pipeline_mode = #tpu.pipeline_mode<synchronous>, transform_indices = @transform_26, window_bounds = array<i64: 8, 8>}, {pipeline_mode = #tpu.pipeline_mode<synchronous>, transform_indices = @transform_27, window_bounds = array<i64: 1, 8>}, {pipeline_mode = #tpu.pipeline_mode<synchronous>, transform_indices = @transform_28, window_bounds = array<i64: 16, 8>}, {pipeline_mode = #tpu.pipeline_mode<synchronous>, transform_indices = @transform_29, window_bounds = array<i64: 1, 8>}, {transform_indices = @transform_30, window_bounds = array<i64: 1, 4, 8>}]} {
    %c0 = arith.constant 0 : index
    %c0_0 = arith.constant 0 : index
    %c0_1 = arith.constant 0 : index
    %0 = vector.load %arg1[%c0, %c0_0, %c0_1] : memref<1x16x4xf32, #tpu.memory_space<vmem>>, vector<1x16x4xf32>
    %1 = vector.shape_cast %0 : vector<1x16x4xf32> to vector<16x4xf32>
    %2 = tpu.transpose %1, [1, 0] : vector<16x4xf32> -> vector<4x16xf32>
    %c0_2 = arith.constant 0 : index
    %c0_3 = arith.constant 0 : index
    %3 = vector.load %arg2[%c0_2, %c0_3] : memref<16x32xf32, #tpu.memory_space<vmem>>, vector<16x32xf32>
    %cst = arith.constant dense<0.000000e+00> : vector<4x32xf32>
    %4 = tpu.matmul %2, %3, %cst {dimension_numbers = #tpu.dot_dimension_numbers<[1], [0], [0], [1], [0, 0, 1, 1], [], []>} : vector<4x16xf32>, vector<16x32xf32>, vector<4x32xf32> -> vector<4x32xf32>
    %c0_4 = arith.constant 0 : index
    %c0_5 = arith.constant 0 : index
    %5 = vector.load %arg3[%c0_4, %c0_5] : memref<1x32xf32, #tpu.memory_space<vmem>>, vector<1x32xf32>
    %6 = vector.broadcast %5 : vector<1x32xf32> to vector<4x32xf32>
    %7 = arith.addf %4, %6 : vector<4x32xf32>
    %c0_6 = arith.constant 0 : index
    %c0_7 = arith.constant 0 : index
    %8 = vector.load %arg4[%c0_6, %c0_7] : memref<4x32xf32, #tpu.memory_space<vmem>>, vector<4x32xf32>
    %9 = arith.addf %7, %8 : vector<4x32xf32>
    %10 = vector.shape_cast %9 : vector<4x32xf32> to vector<1x4x32xf32>
    %11 = vector.shape_cast %10 : vector<1x4x32xf32> to vector<1x4x32xf32>
    %12 = vector.broadcast %11 : vector<1x4x32xf32> to vector<4x4x32xf32>
    %c0_8 = arith.constant 0 : index
    %c0_9 = arith.constant 0 : index
    %c0_10 = arith.constant 0 : index
    %c0_11 = arith.constant 0 : index
    %13 = vector.load %arg5[%c0_8, %c0_9, %c0_10, %c0_11] : memref<2x4x32x8xf32, #tpu.memory_space<vmem>>, vector<1x4x32x8xf32>
    %14 = vector.shape_cast %13 : vector<1x4x32x8xf32> to vector<4x32x8xf32>
    "tpu.trace_start"() <{level = 10 : i32, message = "hnd,hdf->hnf"}> : () -> ()
    %cst_12 = arith.constant dense<0.000000e+00> : vector<4x4x8xf32>
    %15 = tpu.matmul %12, %14, %cst_12 {dimension_numbers = #tpu.dot_dimension_numbers<[2], [1], [1], [2], [0, 0, 0, 1, 1, 2], [0], [0]>} : vector<4x4x32xf32>, vector<4x32x8xf32>, vector<4x4x8xf32> -> vector<4x4x8xf32>
    "tpu.trace_stop"() : () -> ()
    %c0_13 = arith.constant 0 : index
    %c0_14 = arith.constant 0 : index
    %c0_15 = arith.constant 0 : index
    %c0_16 = arith.constant 0 : index
    %16 = vector.load %arg6[%c0_13, %c0_14, %c0_15, %c0_16] : memref<2x4x1x8xf32, #tpu.memory_space<vmem>>, vector<1x4x1x8xf32>
    %17 = vector.shape_cast %16 : vector<1x4x1x8xf32> to vector<4x1x8xf32>
    %18 = vector.broadcast %17 : vector<4x1x8xf32> to vector<4x4x8xf32>
    %19 = arith.addf %15, %18 : vector<4x4x8xf32>
    %c0_17 = arith.constant 0 : index
    %c0_18 = arith.constant 0 : index
    %c0_19 = arith.constant 0 : index
    %c0_20 = arith.constant 0 : index
    %20 = vector.load %arg7[%c0_17, %c0_18, %c0_19, %c0_20] : memref<2x4x32x8xf32, #tpu.memory_space<vmem>>, vector<1x4x32x8xf32>
    %21 = vector.shape_cast %20 : vector<1x4x32x8xf32> to vector<4x32x8xf32>
    "tpu.trace_start"() <{level = 10 : i32, message = "hnd,hdf->hnf"}> : () -> ()
    %cst_21 = arith.constant dense<0.000000e+00> : vector<4x4x8xf32>
    %22 = tpu.matmul %12, %21, %cst_21 {dimension_numbers = #tpu.dot_dimension_numbers<[2], [1], [1], [2], [0, 0, 0, 1, 1, 2], [0], [0]>} : vector<4x4x32xf32>, vector<4x32x8xf32>, vector<4x4x8xf32> -> vector<4x4x8xf32>
    "tpu.trace_stop"() : () -> ()
    %c0_22 = arith.constant 0 : index
    %c0_23 = arith.constant 0 : index
    %c0_24 = arith.constant 0 : index
    %c0_25 = arith.constant 0 : index
    %23 = vector.load %arg8[%c0_22, %c0_23, %c0_24, %c0_25] : memref<2x4x1x8xf32, #tpu.memory_space<vmem>>, vector<1x4x1x8xf32>
    %24 = vector.shape_cast %23 : vector<1x4x1x8xf32> to vector<4x1x8xf32>
    %25 = vector.broadcast %24 : vector<4x1x8xf32> to vector<4x4x8xf32>
    %26 = arith.addf %22, %25 : vector<4x4x8xf32>
    %c0_26 = arith.constant 0 : index
    %c0_27 = arith.constant 0 : index
    %c0_28 = arith.constant 0 : index
    %c0_29 = arith.constant 0 : index
    %27 = vector.load %arg9[%c0_26, %c0_27, %c0_28, %c0_29] : memref<2x4x32x8xf32, #tpu.memory_space<vmem>>, vector<1x4x32x8xf32>
    %28 = vector.shape_cast %27 : vector<1x4x32x8xf32> to vector<4x32x8xf32>
    "tpu.trace_start"() <{level = 10 : i32, message = "hnd,hdf->hnf"}> : () -> ()
    %cst_30 = arith.constant dense<0.000000e+00> : vector<4x4x8xf32>
    %29 = tpu.matmul %12, %28, %cst_30 {dimension_numbers = #tpu.dot_dimension_numbers<[2], [1], [1], [2], [0, 0, 0, 1, 1, 2], [0], [0]>} : vector<4x4x32xf32>, vector<4x32x8xf32>, vector<4x4x8xf32> -> vector<4x4x8xf32>
    "tpu.trace_stop"() : () -> ()
    %c0_31 = arith.constant 0 : index
    %c0_32 = arith.constant 0 : index
    %c0_33 = arith.constant 0 : index
    %c0_34 = arith.constant 0 : index
    %30 = vector.load %arg10[%c0_31, %c0_32, %c0_33, %c0_34] : memref<2x4x1x8xf32, #tpu.memory_space<vmem>>, vector<1x4x1x8xf32>
    %31 = vector.shape_cast %30 : vector<1x4x1x8xf32> to vector<4x1x8xf32>
    %32 = vector.broadcast %31 : vector<4x1x8xf32> to vector<4x4x8xf32>
    %33 = arith.addf %29, %32 : vector<4x4x8xf32>
    "tpu.trace_start"() <{level = 10 : i32, message = "hqf,hkf->hqk"}> : () -> ()
    %cst_35 = arith.constant dense<0.000000e+00> : vector<4x4x4xf32>
    %34 = tpu.matmul %19, %26, %cst_35 {dimension_numbers = #tpu.dot_dimension_numbers<[2], [2], [1], [1], [0, 0, 0, 1, 1, 1], [0], [0]>} : vector<4x4x8xf32>, vector<4x4x8xf32>, vector<4x4x4xf32> -> vector<4x4x4xf32>
    "tpu.trace_stop"() : () -> ()
    %cst_36 = arith.constant 0.353553385 : f32
    %35 = vector.broadcast %cst_36 : f32 to vector<4x4x4xf32>
    %36 = arith.mulf %34, %35 : vector<4x4x4xf32>
    %cst_37 = arith.constant dense<0xFF800000> : vector<4x4xf32>
    %37 = vector.multi_reduction <maximumf>, %36, %cst_37 [2] : vector<4x4x4xf32> to vector<4x4xf32>
    %38 = vector.shape_cast %37 : vector<4x4xf32> to vector<4x4x1xf32>
    %39 = vector.broadcast %38 : vector<4x4x1xf32> to vector<4x4x4xf32>
    %40 = arith.subf %36, %39 : vector<4x4x4xf32>
    %41 = math.exp %40 : vector<4x4x4xf32>
    %cst_38 = arith.constant dense<0.000000e+00> : vector<4x4xf32>
    %42 = vector.multi_reduction <add>, %41, %cst_38 [2] : vector<4x4x4xf32> to vector<4x4xf32>
    %43 = vector.shape_cast %42 : vector<4x4xf32> to vector<4x4x1xf32>
    %44 = tpu.reciprocal %43 {approx = true} : vector<4x4x1xf32> -> vector<4x4x1xf32>
    %45 = vector.broadcast %44 : vector<4x4x1xf32> to vector<4x4x4xf32>
    %46 = arith.mulf %41, %45 : vector<4x4x4xf32>
    "tpu.trace_start"() <{level = 10 : i32, message = "hqk,hkf->hqf"}> : () -> ()
    %cst_39 = arith.constant dense<0.000000e+00> : vector<4x4x8xf32>
    %47 = tpu.matmul %46, %33, %cst_39 {dimension_numbers = #tpu.dot_dimension_numbers<[2], [1], [1], [2], [0, 0, 0, 1, 1, 2], [0], [0]>} : vector<4x4x4xf32>, vector<4x4x8xf32>, vector<4x4x8xf32> -> vector<4x4x8xf32>
    "tpu.trace_stop"() : () -> ()
    %c0_40 = arith.constant 0 : index
    %c0_41 = arith.constant 0 : index
    %c0_42 = arith.constant 0 : index
    %c0_43 = arith.constant 0 : index
    %48 = vector.load %arg11[%c0_40, %c0_41, %c0_42, %c0_43] : memref<2x4x8x32xf32, #tpu.memory_space<vmem>>, vector<1x4x8x32xf32>
    %49 = vector.shape_cast %48 : vector<1x4x8x32xf32> to vector<4x8x32xf32>
    "tpu.trace_start"() <{level = 10 : i32, message = "hqf,hfd->hqd"}> : () -> ()
    %cst_44 = arith.constant dense<0.000000e+00> : vector<4x4x32xf32>
    %50 = tpu.matmul %47, %49, %cst_44 {dimension_numbers = #tpu.dot_dimension_numbers<[2], [1], [1], [2], [0, 0, 0, 1, 1, 2], [0], [0]>} : vector<4x4x8xf32>, vector<4x8x32xf32>, vector<4x4x32xf32> -> vector<4x4x32xf32>
    "tpu.trace_stop"() : () -> ()
    %cst_45 = arith.constant dense<0.000000e+00> : vector<4x32xf32>
    %51 = vector.multi_reduction <add>, %50, %cst_45 [0] : vector<4x4x32xf32> to vector<4x32xf32>
    %c0_46 = arith.constant 0 : index
    %c0_47 = arith.constant 0 : index
    %c0_48 = arith.constant 0 : index
    %52 = vector.load %arg12[%c0_46, %c0_47, %c0_48] : memref<2x1x32xf32, #tpu.memory_space<vmem>>, vector<1x1x32xf32>
    %53 = vector.shape_cast %52 : vector<1x1x32xf32> to vector<1x32xf32>
    %54 = vector.broadcast %53 : vector<1x32xf32> to vector<4x32xf32>
    %55 = arith.addf %51, %54 : vector<4x32xf32>
    %56 = arith.addf %9, %55 : vector<4x32xf32>
    %c0_49 = arith.constant 0 : index
    %c0_50 = arith.constant 0 : index
    %c0_51 = arith.constant 0 : index
    %57 = vector.load %arg13[%c0_49, %c0_50, %c0_51] : memref<2x1x32xf32, #tpu.memory_space<vmem>>, vector<1x1x32xf32>
    %58 = vector.shape_cast %57 : vector<1x1x32xf32> to vector<1x32xf32>
    %c0_52 = arith.constant 0 : index
    %c0_53 = arith.constant 0 : index
    %c0_54 = arith.constant 0 : index
    %59 = vector.load %arg14[%c0_52, %c0_53, %c0_54] : memref<2x1x32xf32, #tpu.memory_space<vmem>>, vector<1x1x32xf32>
    %60 = vector.shape_cast %59 : vector<1x1x32xf32> to vector<1x32xf32>
    %cst_55 = arith.constant dense<0.000000e+00> : vector<4xf32>
    %61 = vector.multi_reduction <add>, %56, %cst_55 [1] : vector<4x32xf32> to vector<4xf32>
    %62 = vector.shape_cast %61 : vector<4xf32> to vector<4x1xf32>
    %cst_56 = arith.constant 3.200000e+01 : f32
    %63 = vector.broadcast %cst_56 : f32 to vector<4x1xf32>
    %64 = arith.divf %62, %63 : vector<4x1xf32>
    %65 = vector.broadcast %64 : vector<4x1xf32> to vector<4x32xf32>
    %66 = arith.subf %56, %65 : vector<4x32xf32>
    %67 = arith.mulf %66, %66 : vector<4x32xf32>
    %cst_57 = arith.constant dense<0.000000e+00> : vector<4xf32>
    %68 = vector.multi_reduction <add>, %67, %cst_57 [1] : vector<4x32xf32> to vector<4xf32>
    %69 = vector.shape_cast %68 : vector<4xf32> to vector<4x1xf32>
    %cst_58 = arith.constant 3.200000e+01 : f32
    %70 = vector.broadcast %cst_58 : f32 to vector<4x1xf32>
    %71 = arith.divf %69, %70 : vector<4x1xf32>
    %72 = vector.broadcast %64 : vector<4x1xf32> to vector<4x32xf32>
    %73 = arith.subf %56, %72 : vector<4x32xf32>
    %cst_59 = arith.constant 9.99999974E-6 : f32
    %74 = vector.broadcast %cst_59 : f32 to vector<4x1xf32>
    %75 = arith.addf %71, %74 : vector<4x1xf32>
    %76 = math.rsqrt %75 : vector<4x1xf32>
    %77 = vector.broadcast %76 : vector<4x1xf32> to vector<4x32xf32>
    %78 = arith.mulf %73, %77 : vector<4x32xf32>
    %79 = vector.broadcast %58 : vector<1x32xf32> to vector<4x32xf32>
    %80 = arith.mulf %78, %79 : vector<4x32xf32>
    %81 = vector.broadcast %60 : vector<1x32xf32> to vector<4x32xf32>
    %82 = arith.addf %80, %81 : vector<4x32xf32>
    %c0_60 = arith.constant 0 : index
    %c0_61 = arith.constant 0 : index
    %c0_62 = arith.constant 0 : index
    %83 = vector.load %arg15[%c0_60, %c0_61, %c0_62] : memref<2x32x64xf32, #tpu.memory_space<vmem>>, vector<1x32x64xf32>
    %84 = vector.shape_cast %83 : vector<1x32x64xf32> to vector<32x64xf32>
    %cst_63 = arith.constant dense<0.000000e+00> : vector<4x64xf32>
    %85 = tpu.matmul %82, %84, %cst_63 {dimension_numbers = #tpu.dot_dimension_numbers<[1], [0], [0], [1], [0, 0, 1, 1], [], []>} : vector<4x32xf32>, vector<32x64xf32>, vector<4x64xf32> -> vector<4x64xf32>
    %c0_64 = arith.constant 0 : index
    %c0_65 = arith.constant 0 : index
    %c0_66 = arith.constant 0 : index
    %86 = vector.load %arg16[%c0_64, %c0_65, %c0_66] : memref<2x1x64xf32, #tpu.memory_space<vmem>>, vector<1x1x64xf32>
    %87 = vector.shape_cast %86 : vector<1x1x64xf32> to vector<1x64xf32>
    %88 = vector.broadcast %87 : vector<1x64xf32> to vector<4x64xf32>
    %89 = arith.addf %85, %88 : vector<4x64xf32>
    %90 = arith.mulf %89, %89 : vector<4x64xf32>
    %91 = arith.mulf %89, %90 : vector<4x64xf32>
    %cst_67 = arith.constant 4.471500e-02 : f32
    %92 = vector.broadcast %cst_67 : f32 to vector<4x64xf32>
    %93 = arith.mulf %92, %91 : vector<4x64xf32>
    %94 = arith.addf %89, %93 : vector<4x64xf32>
    %cst_68 = arith.constant 0.797884583 : f32
    %95 = vector.broadcast %cst_68 : f32 to vector<4x64xf32>
    %96 = arith.mulf %95, %94 : vector<4x64xf32>
    %97 = math.tanh %96 : vector<4x64xf32>
    %cst_69 = arith.constant 1.000000e+00 : f32
    %98 = vector.broadcast %cst_69 : f32 to vector<4x64xf32>
    %99 = arith.addf %98, %97 : vector<4x64xf32>
    %cst_70 = arith.constant 5.000000e-01 : f32
    %100 = vector.broadcast %cst_70 : f32 to vector<4x64xf32>
    %101 = arith.mulf %100, %99 : vector<4x64xf32>
    %102 = arith.mulf %89, %101 : vector<4x64xf32>
    %c0_71 = arith.constant 0 : index
    %c0_72 = arith.constant 0 : index
    %c0_73 = arith.constant 0 : index
    %103 = vector.load %arg17[%c0_71, %c0_72, %c0_73] : memref<2x64x32xf32, #tpu.memory_space<vmem>>, vector<1x64x32xf32>
    %104 = vector.shape_cast %103 : vector<1x64x32xf32> to vector<64x32xf32>
    %cst_74 = arith.constant dense<0.000000e+00> : vector<4x32xf32>
    %105 = tpu.matmul %102, %104, %cst_74 {dimension_numbers = #tpu.dot_dimension_numbers<[1], [0], [0], [1], [0, 0, 1, 1], [], []>} : vector<4x64xf32>, vector<64x32xf32>, vector<4x32xf32> -> vector<4x32xf32>
    %c0_75 = arith.constant 0 : index
    %c0_76 = arith.constant 0 : index
    %c0_77 = arith.constant 0 : index
    %106 = vector.load %arg18[%c0_75, %c0_76, %c0_77] : memref<2x1x32xf32, #tpu.memory_space<vmem>>, vector<1x1x32xf32>
    %107 = vector.shape_cast %106 : vector<1x1x32xf32> to vector<1x32xf32>
    %108 = vector.broadcast %107 : vector<1x32xf32> to vector<4x32xf32>
    %109 = arith.addf %105, %108 : vector<4x32xf32>
    %110 = arith.addf %82, %109 : vector<4x32xf32>
    %c0_78 = arith.constant 0 : index
    %c0_79 = arith.constant 0 : index
    %c0_80 = arith.constant 0 : index
    %111 = vector.load %arg19[%c0_78, %c0_79, %c0_80] : memref<2x1x32xf32, #tpu.memory_space<vmem>>, vector<1x1x32xf32>
    %112 = vector.shape_cast %111 : vector<1x1x32xf32> to vector<1x32xf32>
    %c0_81 = arith.constant 0 : index
    %c0_82 = arith.constant 0 : index
    %c0_83 = arith.constant 0 : index
    %113 = vector.load %arg20[%c0_81, %c0_82, %c0_83] : memref<2x1x32xf32, #tpu.memory_space<vmem>>, vector<1x1x32xf32>
    %114 = vector.shape_cast %113 : vector<1x1x32xf32> to vector<1x32xf32>
    %cst_84 = arith.constant dense<0.000000e+00> : vector<4xf32>
    %115 = vector.multi_reduction <add>, %110, %cst_84 [1] : vector<4x32xf32> to vector<4xf32>
    %116 = vector.shape_cast %115 : vector<4xf32> to vector<4x1xf32>
    %cst_85 = arith.constant 3.200000e+01 : f32
    %117 = vector.broadcast %cst_85 : f32 to vector<4x1xf32>
    %118 = arith.divf %116, %117 : vector<4x1xf32>
    %119 = vector.broadcast %118 : vector<4x1xf32> to vector<4x32xf32>
    %120 = arith.subf %110, %119 : vector<4x32xf32>
    %121 = arith.mulf %120, %120 : vector<4x32xf32>
    %cst_86 = arith.constant dense<0.000000e+00> : vector<4xf32>
    %122 = vector.multi_reduction <add>, %121, %cst_86 [1] : vector<4x32xf32> to vector<4xf32>
    %123 = vector.shape_cast %122 : vector<4xf32> to vector<4x1xf32>
    %cst_87 = arith.constant 3.200000e+01 : f32
    %124 = vector.broadcast %cst_87 : f32 to vector<4x1xf32>
    %125 = arith.divf %123, %124 : vector<4x1xf32>
    %126 = vector.broadcast %118 : vector<4x1xf32> to vector<4x32xf32>
    %127 = arith.subf %110, %126 : vector<4x32xf32>
    %cst_88 = arith.constant 9.99999974E-6 : f32
    %128 = vector.broadcast %cst_88 : f32 to vector<4x1xf32>
    %129 = arith.addf %125, %128 : vector<4x1xf32>
    %130 = math.rsqrt %129 : vector<4x1xf32>
    %131 = vector.broadcast %130 : vector<4x1xf32> to vector<4x32xf32>
    %132 = arith.mulf %127, %131 : vector<4x32xf32>
    %133 = vector.broadcast %112 : vector<1x32xf32> to vector<4x32xf32>
    %134 = arith.mulf %132, %133 : vector<4x32xf32>
    %135 = vector.broadcast %114 : vector<1x32xf32> to vector<4x32xf32>
    %136 = arith.addf %134, %135 : vector<4x32xf32>
    %137 = vector.shape_cast %136 : vector<4x32xf32> to vector<1x4x32xf32>
    %138 = vector.shape_cast %137 : vector<1x4x32xf32> to vector<1x4x32xf32>
    %139 = vector.broadcast %138 : vector<1x4x32xf32> to vector<4x4x32xf32>
    %c1 = arith.constant 1 : index
    %c0_89 = arith.constant 0 : index
    %c0_90 = arith.constant 0 : index
    %c0_91 = arith.constant 0 : index
    %140 = vector.load %arg5[%c1, %c0_89, %c0_90, %c0_91] : memref<2x4x32x8xf32, #tpu.memory_space<vmem>>, vector<1x4x32x8xf32>
    %141 = vector.shape_cast %140 : vector<1x4x32x8xf32> to vector<4x32x8xf32>
    "tpu.trace_start"() <{level = 10 : i32, message = "hnd,hdf->hnf"}> : () -> ()
    %cst_92 = arith.constant dense<0.000000e+00> : vector<4x4x8xf32>
    %142 = tpu.matmul %139, %141, %cst_92 {dimension_numbers = #tpu.dot_dimension_numbers<[2], [1], [1], [2], [0, 0, 0, 1, 1, 2], [0], [0]>} : vector<4x4x32xf32>, vector<4x32x8xf32>, vector<4x4x8xf32> -> vector<4x4x8xf32>
    "tpu.trace_stop"() : () -> ()
    %c1_93 = arith.constant 1 : index
    %c0_94 = arith.constant 0 : index
    %c0_95 = arith.constant 0 : index
    %c0_96 = arith.constant 0 : index
    %143 = vector.load %arg6[%c1_93, %c0_94, %c0_95, %c0_96] : memref<2x4x1x8xf32, #tpu.memory_space<vmem>>, vector<1x4x1x8xf32>
    %144 = vector.shape_cast %143 : vector<1x4x1x8xf32> to vector<4x1x8xf32>
    %145 = vector.broadcast %144 : vector<4x1x8xf32> to vector<4x4x8xf32>
    %146 = arith.addf %142, %145 : vector<4x4x8xf32>
    %c1_97 = arith.constant 1 : index
    %c0_98 = arith.constant 0 : index
    %c0_99 = arith.constant 0 : index
    %c0_100 = arith.constant 0 : index
    %147 = vector.load %arg7[%c1_97, %c0_98, %c0_99, %c0_100] : memref<2x4x32x8xf32, #tpu.memory_space<vmem>>, vector<1x4x32x8xf32>
    %148 = vector.shape_cast %147 : vector<1x4x32x8xf32> to vector<4x32x8xf32>
    "tpu.trace_start"() <{level = 10 : i32, message = "hnd,hdf->hnf"}> : () -> ()
    %cst_101 = arith.constant dense<0.000000e+00> : vector<4x4x8xf32>
    %149 = tpu.matmul %139, %148, %cst_101 {dimension_numbers = #tpu.dot_dimension_numbers<[2], [1], [1], [2], [0, 0, 0, 1, 1, 2], [0], [0]>} : vector<4x4x32xf32>, vector<4x32x8xf32>, vector<4x4x8xf32> -> vector<4x4x8xf32>
    "tpu.trace_stop"() : () -> ()
    %c1_102 = arith.constant 1 : index
    %c0_103 = arith.constant 0 : index
    %c0_104 = arith.constant 0 : index
    %c0_105 = arith.constant 0 : index
    %150 = vector.load %arg8[%c1_102, %c0_103, %c0_104, %c0_105] : memref<2x4x1x8xf32, #tpu.memory_space<vmem>>, vector<1x4x1x8xf32>
    %151 = vector.shape_cast %150 : vector<1x4x1x8xf32> to vector<4x1x8xf32>
    %152 = vector.broadcast %151 : vector<4x1x8xf32> to vector<4x4x8xf32>
    %153 = arith.addf %149, %152 : vector<4x4x8xf32>
    %c1_106 = arith.constant 1 : index
    %c0_107 = arith.constant 0 : index
    %c0_108 = arith.constant 0 : index
    %c0_109 = arith.constant 0 : index
    %154 = vector.load %arg9[%c1_106, %c0_107, %c0_108, %c0_109] : memref<2x4x32x8xf32, #tpu.memory_space<vmem>>, vector<1x4x32x8xf32>
    %155 = vector.shape_cast %154 : vector<1x4x32x8xf32> to vector<4x32x8xf32>
    "tpu.trace_start"() <{level = 10 : i32, message = "hnd,hdf->hnf"}> : () -> ()
    %cst_110 = arith.constant dense<0.000000e+00> : vector<4x4x8xf32>
    %156 = tpu.matmul %139, %155, %cst_110 {dimension_numbers = #tpu.dot_dimension_numbers<[2], [1], [1], [2], [0, 0, 0, 1, 1, 2], [0], [0]>} : vector<4x4x32xf32>, vector<4x32x8xf32>, vector<4x4x8xf32> -> vector<4x4x8xf32>
    "tpu.trace_stop"() : () -> ()
    %c1_111 = arith.constant 1 : index
    %c0_112 = arith.constant 0 : index
    %c0_113 = arith.constant 0 : index
    %c0_114 = arith.constant 0 : index
    %157 = vector.load %arg10[%c1_111, %c0_112, %c0_113, %c0_114] : memref<2x4x1x8xf32, #tpu.memory_space<vmem>>, vector<1x4x1x8xf32>
    %158 = vector.shape_cast %157 : vector<1x4x1x8xf32> to vector<4x1x8xf32>
    %159 = vector.broadcast %158 : vector<4x1x8xf32> to vector<4x4x8xf32>
    %160 = arith.addf %156, %159 : vector<4x4x8xf32>
    "tpu.trace_start"() <{level = 10 : i32, message = "hqf,hkf->hqk"}> : () -> ()
    %cst_115 = arith.constant dense<0.000000e+00> : vector<4x4x4xf32>
    %161 = tpu.matmul %146, %153, %cst_115 {dimension_numbers = #tpu.dot_dimension_numbers<[2], [2], [1], [1], [0, 0, 0, 1, 1, 1], [0], [0]>} : vector<4x4x8xf32>, vector<4x4x8xf32>, vector<4x4x4xf32> -> vector<4x4x4xf32>
    "tpu.trace_stop"() : () -> ()
    %cst_116 = arith.constant 0.353553385 : f32
    %162 = vector.broadcast %cst_116 : f32 to vector<4x4x4xf32>
    %163 = arith.mulf %161, %162 : vector<4x4x4xf32>
    %cst_117 = arith.constant dense<0xFF800000> : vector<4x4xf32>
    %164 = vector.multi_reduction <maximumf>, %163, %cst_117 [2] : vector<4x4x4xf32> to vector<4x4xf32>
    %165 = vector.shape_cast %164 : vector<4x4xf32> to vector<4x4x1xf32>
    %166 = vector.broadcast %165 : vector<4x4x1xf32> to vector<4x4x4xf32>
    %167 = arith.subf %163, %166 : vector<4x4x4xf32>
    %168 = math.exp %167 : vector<4x4x4xf32>
    %cst_118 = arith.constant dense<0.000000e+00> : vector<4x4xf32>
    %169 = vector.multi_reduction <add>, %168, %cst_118 [2] : vector<4x4x4xf32> to vector<4x4xf32>
    %170 = vector.shape_cast %169 : vector<4x4xf32> to vector<4x4x1xf32>
    %171 = tpu.reciprocal %170 {approx = true} : vector<4x4x1xf32> -> vector<4x4x1xf32>
    %172 = vector.broadcast %171 : vector<4x4x1xf32> to vector<4x4x4xf32>
    %173 = arith.mulf %168, %172 : vector<4x4x4xf32>
    "tpu.trace_start"() <{level = 10 : i32, message = "hqk,hkf->hqf"}> : () -> ()
    %cst_119 = arith.constant dense<0.000000e+00> : vector<4x4x8xf32>
    %174 = tpu.matmul %173, %160, %cst_119 {dimension_numbers = #tpu.dot_dimension_numbers<[2], [1], [1], [2], [0, 0, 0, 1, 1, 2], [0], [0]>} : vector<4x4x4xf32>, vector<4x4x8xf32>, vector<4x4x8xf32> -> vector<4x4x8xf32>
    "tpu.trace_stop"() : () -> ()
    %c1_120 = arith.constant 1 : index
    %c0_121 = arith.constant 0 : index
    %c0_122 = arith.constant 0 : index
    %c0_123 = arith.constant 0 : index
    %175 = vector.load %arg11[%c1_120, %c0_121, %c0_122, %c0_123] : memref<2x4x8x32xf32, #tpu.memory_space<vmem>>, vector<1x4x8x32xf32>
    %176 = vector.shape_cast %175 : vector<1x4x8x32xf32> to vector<4x8x32xf32>
    "tpu.trace_start"() <{level = 10 : i32, message = "hqf,hfd->hqd"}> : () -> ()
    %cst_124 = arith.constant dense<0.000000e+00> : vector<4x4x32xf32>
    %177 = tpu.matmul %174, %176, %cst_124 {dimension_numbers = #tpu.dot_dimension_numbers<[2], [1], [1], [2], [0, 0, 0, 1, 1, 2], [0], [0]>} : vector<4x4x8xf32>, vector<4x8x32xf32>, vector<4x4x32xf32> -> vector<4x4x32xf32>
    "tpu.trace_stop"() : () -> ()
    %cst_125 = arith.constant dense<0.000000e+00> : vector<4x32xf32>
    %178 = vector.multi_reduction <add>, %177, %cst_125 [0] : vector<4x4x32xf32> to vector<4x32xf32>
    %c1_126 = arith.constant 1 : index
    %c0_127 = arith.constant 0 : index
    %c0_128 = arith.constant 0 : index
    %179 = vector.load %arg12[%c1_126, %c0_127, %c0_128] : memref<2x1x32xf32, #tpu.memory_space<vmem>>, vector<1x1x32xf32>
    %180 = vector.shape_cast %179 : vector<1x1x32xf32> to vector<1x32xf32>
    %181 = vector.broadcast %180 : vector<1x32xf32> to vector<4x32xf32>
    %182 = arith.addf %178, %181 : vector<4x32xf32>
    %183 = arith.addf %136, %182 : vector<4x32xf32>
    %c1_129 = arith.constant 1 : index
    %c0_130 = arith.constant 0 : index
    %c0_131 = arith.constant 0 : index
    %184 = vector.load %arg13[%c1_129, %c0_130, %c0_131] : memref<2x1x32xf32, #tpu.memory_space<vmem>>, vector<1x1x32xf32>
    %185 = vector.shape_cast %184 : vector<1x1x32xf32> to vector<1x32xf32>
    %c1_132 = arith.constant 1 : index
    %c0_133 = arith.constant 0 : index
    %c0_134 = arith.constant 0 : index
    %186 = vector.load %arg14[%c1_132, %c0_133, %c0_134] : memref<2x1x32xf32, #tpu.memory_space<vmem>>, vector<1x1x32xf32>
    %187 = vector.shape_cast %186 : vector<1x1x32xf32> to vector<1x32xf32>
    %cst_135 = arith.constant dense<0.000000e+00> : vector<4xf32>
    %188 = vector.multi_reduction <add>, %183, %cst_135 [1] : vector<4x32xf32> to vector<4xf32>
    %189 = vector.shape_cast %188 : vector<4xf32> to vector<4x1xf32>
    %cst_136 = arith.constant 3.200000e+01 : f32
    %190 = vector.broadcast %cst_136 : f32 to vector<4x1xf32>
    %191 = arith.divf %189, %190 : vector<4x1xf32>
    %192 = vector.broadcast %191 : vector<4x1xf32> to vector<4x32xf32>
    %193 = arith.subf %183, %192 : vector<4x32xf32>
    %194 = arith.mulf %193, %193 : vector<4x32xf32>
    %cst_137 = arith.constant dense<0.000000e+00> : vector<4xf32>
    %195 = vector.multi_reduction <add>, %194, %cst_137 [1] : vector<4x32xf32> to vector<4xf32>
    %196 = vector.shape_cast %195 : vector<4xf32> to vector<4x1xf32>
    %cst_138 = arith.constant 3.200000e+01 : f32
    %197 = vector.broadcast %cst_138 : f32 to vector<4x1xf32>
    %198 = arith.divf %196, %197 : vector<4x1xf32>
    %199 = vector.broadcast %191 : vector<4x1xf32> to vector<4x32xf32>
    %200 = arith.subf %183, %199 : vector<4x32xf32>
    %cst_139 = arith.constant 9.99999974E-6 : f32
    %201 = vector.broadcast %cst_139 : f32 to vector<4x1xf32>
    %202 = arith.addf %198, %201 : vector<4x1xf32>
    %203 = math.rsqrt %202 : vector<4x1xf32>
    %204 = vector.broadcast %203 : vector<4x1xf32> to vector<4x32xf32>
    %205 = arith.mulf %200, %204 : vector<4x32xf32>
    %206 = vector.broadcast %185 : vector<1x32xf32> to vector<4x32xf32>
    %207 = arith.mulf %205, %206 : vector<4x32xf32>
    %208 = vector.broadcast %187 : vector<1x32xf32> to vector<4x32xf32>
    %209 = arith.addf %207, %208 : vector<4x32xf32>
    %c1_140 = arith.constant 1 : index
    %c0_141 = arith.constant 0 : index
    %c0_142 = arith.constant 0 : index
    %210 = vector.load %arg15[%c1_140, %c0_141, %c0_142] : memref<2x32x64xf32, #tpu.memory_space<vmem>>, vector<1x32x64xf32>
    %211 = vector.shape_cast %210 : vector<1x32x64xf32> to vector<32x64xf32>
    %cst_143 = arith.constant dense<0.000000e+00> : vector<4x64xf32>
    %212 = tpu.matmul %209, %211, %cst_143 {dimension_numbers = #tpu.dot_dimension_numbers<[1], [0], [0], [1], [0, 0, 1, 1], [], []>} : vector<4x32xf32>, vector<32x64xf32>, vector<4x64xf32> -> vector<4x64xf32>
    %c1_144 = arith.constant 1 : index
    %c0_145 = arith.constant 0 : index
    %c0_146 = arith.constant 0 : index
    %213 = vector.load %arg16[%c1_144, %c0_145, %c0_146] : memref<2x1x64xf32, #tpu.memory_space<vmem>>, vector<1x1x64xf32>
    %214 = vector.shape_cast %213 : vector<1x1x64xf32> to vector<1x64xf32>
    %215 = vector.broadcast %214 : vector<1x64xf32> to vector<4x64xf32>
    %216 = arith.addf %212, %215 : vector<4x64xf32>
    %217 = arith.mulf %216, %216 : vector<4x64xf32>
    %218 = arith.mulf %216, %217 : vector<4x64xf32>
    %cst_147 = arith.constant 4.471500e-02 : f32
    %219 = vector.broadcast %cst_147 : f32 to vector<4x64xf32>
    %220 = arith.mulf %219, %218 : vector<4x64xf32>
    %221 = arith.addf %216, %220 : vector<4x64xf32>
    %cst_148 = arith.constant 0.797884583 : f32
    %222 = vector.broadcast %cst_148 : f32 to vector<4x64xf32>
    %223 = arith.mulf %222, %221 : vector<4x64xf32>
    %224 = math.tanh %223 : vector<4x64xf32>
    %cst_149 = arith.constant 1.000000e+00 : f32
    %225 = vector.broadcast %cst_149 : f32 to vector<4x64xf32>
    %226 = arith.addf %225, %224 : vector<4x64xf32>
    %cst_150 = arith.constant 5.000000e-01 : f32
    %227 = vector.broadcast %cst_150 : f32 to vector<4x64xf32>
    %228 = arith.mulf %227, %226 : vector<4x64xf32>
    %229 = arith.mulf %216, %228 : vector<4x64xf32>
    %c1_151 = arith.constant 1 : index
    %c0_152 = arith.constant 0 : index
    %c0_153 = arith.constant 0 : index
    %230 = vector.load %arg17[%c1_151, %c0_152, %c0_153] : memref<2x64x32xf32, #tpu.memory_space<vmem>>, vector<1x64x32xf32>
    %231 = vector.shape_cast %230 : vector<1x64x32xf32> to vector<64x32xf32>
    %cst_154 = arith.constant dense<0.000000e+00> : vector<4x32xf32>
    %232 = tpu.matmul %229, %231, %cst_154 {dimension_numbers = #tpu.dot_dimension_numbers<[1], [0], [0], [1], [0, 0, 1, 1], [], []>} : vector<4x64xf32>, vector<64x32xf32>, vector<4x32xf32> -> vector<4x32xf32>
    %c1_155 = arith.constant 1 : index
    %c0_156 = arith.constant 0 : index
    %c0_157 = arith.constant 0 : index
    %233 = vector.load %arg18[%c1_155, %c0_156, %c0_157] : memref<2x1x32xf32, #tpu.memory_space<vmem>>, vector<1x1x32xf32>
    %234 = vector.shape_cast %233 : vector<1x1x32xf32> to vector<1x32xf32>
    %235 = vector.broadcast %234 : vector<1x32xf32> to vector<4x32xf32>
    %236 = arith.addf %232, %235 : vector<4x32xf32>
    %237 = arith.addf %209, %236 : vector<4x32xf32>
    %c1_158 = arith.constant 1 : index
    %c0_159 = arith.constant 0 : index
    %c0_160 = arith.constant 0 : index
    %238 = vector.load %arg19[%c1_158, %c0_159, %c0_160] : memref<2x1x32xf32, #tpu.memory_space<vmem>>, vector<1x1x32xf32>
    %239 = vector.shape_cast %238 : vector<1x1x32xf32> to vector<1x32xf32>
    %c1_161 = arith.constant 1 : index
    %c0_162 = arith.constant 0 : index
    %c0_163 = arith.constant 0 : index
    %240 = vector.load %arg20[%c1_161, %c0_162, %c0_163] : memref<2x1x32xf32, #tpu.memory_space<vmem>>, vector<1x1x32xf32>
    %241 = vector.shape_cast %240 : vector<1x1x32xf32> to vector<1x32xf32>
    %cst_164 = arith.constant dense<0.000000e+00> : vector<4xf32>
    %242 = vector.multi_reduction <add>, %237, %cst_164 [1] : vector<4x32xf32> to vector<4xf32>
    %243 = vector.shape_cast %242 : vector<4xf32> to vector<4x1xf32>
    %cst_165 = arith.constant 3.200000e+01 : f32
    %244 = vector.broadcast %cst_165 : f32 to vector<4x1xf32>
    %245 = arith.divf %243, %244 : vector<4x1xf32>
    %246 = vector.broadcast %245 : vector<4x1xf32> to vector<4x32xf32>
    %247 = arith.subf %237, %246 : vector<4x32xf32>
    %248 = arith.mulf %247, %247 : vector<4x32xf32>
    %cst_166 = arith.constant dense<0.000000e+00> : vector<4xf32>
    %249 = vector.multi_reduction <add>, %248, %cst_166 [1] : vector<4x32xf32> to vector<4xf32>
    %250 = vector.shape_cast %249 : vector<4xf32> to vector<4x1xf32>
    %cst_167 = arith.constant 3.200000e+01 : f32
    %251 = vector.broadcast %cst_167 : f32 to vector<4x1xf32>
    %252 = arith.divf %250, %251 : vector<4x1xf32>
    %253 = vector.broadcast %245 : vector<4x1xf32> to vector<4x32xf32>
    %254 = arith.subf %237, %253 : vector<4x32xf32>
    %cst_168 = arith.constant 9.99999974E-6 : f32
    %255 = vector.broadcast %cst_168 : f32 to vector<4x1xf32>
    %256 = arith.addf %252, %255 : vector<4x1xf32>
    %257 = math.rsqrt %256 : vector<4x1xf32>
    %258 = vector.broadcast %257 : vector<4x1xf32> to vector<4x32xf32>
    %259 = arith.mulf %254, %258 : vector<4x32xf32>
    %260 = vector.broadcast %239 : vector<1x32xf32> to vector<4x32xf32>
    %261 = arith.mulf %259, %260 : vector<4x32xf32>
    %262 = vector.broadcast %241 : vector<1x32xf32> to vector<4x32xf32>
    %263 = arith.addf %261, %262 : vector<4x32xf32>
    %c0_169 = arith.constant 0 : index
    %c0_170 = arith.constant 0 : index
    %264 = vector.load %arg21[%c0_169, %c0_170] : memref<32x32xf32, #tpu.memory_space<vmem>>, vector<32x32xf32>
    %cst_171 = arith.constant dense<0.000000e+00> : vector<4x32xf32>
    %265 = tpu.matmul %263, %264, %cst_171 {dimension_numbers = #tpu.dot_dimension_numbers<[1], [0], [0], [1], [0, 0, 1, 1], [], []>} : vector<4x32xf32>, vector<32x32xf32>, vector<4x32xf32> -> vector<4x32xf32>
    %c0_172 = arith.constant 0 : index
    %c0_173 = arith.constant 0 : index
    %266 = vector.load %arg22[%c0_172, %c0_173] : memref<1x32xf32, #tpu.memory_space<vmem>>, vector<1x32xf32>
    %267 = vector.broadcast %266 : vector<1x32xf32> to vector<4x32xf32>
    %268 = arith.addf %265, %267 : vector<4x32xf32>
    %cst_174 = arith.constant 0.000000e+00 : f32
    %269 = vector.broadcast %cst_174 : f32 to vector<4x32xf32>
    %270 = arith.cmpf ogt, %268, %269 : vector<4x32xf32>
    %cst_175 = arith.constant 0.00999999977 : f32
    %271 = vector.broadcast %cst_175 : f32 to vector<4x32xf32>
    %272 = arith.mulf %271, %268 : vector<4x32xf32>
    %273 = arith.select %270, %268, %272 : vector<4x32xi1>, vector<4x32xf32>
    %c0_176 = arith.constant 0 : index
    %c0_177 = arith.constant 0 : index
    %274 = vector.load %arg23[%c0_176, %c0_177] : memref<32x8xf32, #tpu.memory_space<vmem>>, vector<32x8xf32>
    %cst_178 = arith.constant dense<0.000000e+00> : vector<4x8xf32>
    %275 = tpu.matmul %273, %274, %cst_178 {dimension_numbers = #tpu.dot_dimension_numbers<[1], [0], [0], [1], [0, 0, 1, 1], [], []>} : vector<4x32xf32>, vector<32x8xf32>, vector<4x8xf32> -> vector<4x8xf32>
    %c0_179 = arith.constant 0 : index
    %c0_180 = arith.constant 0 : index
    %276 = vector.load %arg24[%c0_179, %c0_180] : memref<1x8xf32, #tpu.memory_space<vmem>>, vector<1x8xf32>
    %277 = vector.broadcast %276 : vector<1x8xf32> to vector<4x8xf32>
    %278 = arith.addf %275, %277 : vector<4x8xf32>
    %c0_181 = arith.constant 0 : index
    %c0_182 = arith.constant 0 : index
    %279 = vector.load %arg25[%c0_181, %c0_182] : memref<4x4xf32, #tpu.memory_space<vmem>>, vector<4x4xf32>
    %cst_183 = arith.constant dense<0.000000e+00> : vector<4x8xf32>
    %280 = tpu.matmul %279, %278, %cst_183 {dimension_numbers = #tpu.dot_dimension_numbers<[1], [0], [0], [1], [0, 0, 1, 1], [], []>} : vector<4x4xf32>, vector<4x8xf32>, vector<4x8xf32> -> vector<4x8xf32>
    %281 = arith.addf %278, %280 : vector<4x8xf32>
    %c0_184 = arith.constant 0 : index
    %c0_185 = arith.constant 0 : index
    %282 = vector.load %arg26[%c0_184, %c0_185] : memref<4x1xf32, #tpu.memory_space<vmem>>, vector<4x1xf32>
    %283 = vector.broadcast %282 : vector<4x1xf32> to vector<4x8xf32>
    %284 = arith.addf %281, %283 : vector<4x8xf32>
    %c0_186 = arith.constant 0 : index
    %c0_187 = arith.constant 0 : index
    %285 = vector.load %arg27[%c0_186, %c0_187] : memref<8x8xf32, #tpu.memory_space<vmem>>, vector<8x8xf32>
    %cst_188 = arith.constant dense<0.000000e+00> : vector<4x8xf32>
    %286 = tpu.matmul %284, %285, %cst_188 {dimension_numbers = #tpu.dot_dimension_numbers<[1], [0], [0], [1], [0, 0, 1, 1], [], []>} : vector<4x8xf32>, vector<8x8xf32>, vector<4x8xf32> -> vector<4x8xf32>
    %c0_189 = arith.constant 0 : index
    %c0_190 = arith.constant 0 : index
    %287 = vector.load %arg28[%c0_189, %c0_190] : memref<1x8xf32, #tpu.memory_space<vmem>>, vector<1x8xf32>
    %288 = vector.broadcast %287 : vector<1x8xf32> to vector<4x8xf32>
    %289 = arith.addf %286, %288 : vector<4x8xf32>
    %c0_191 = arith.constant 0 : index
    %c0_192 = arith.constant 0 : index
    %290 = vector.load %arg29[%c0_191, %c0_192] : memref<16x8xf32, #tpu.memory_space<vmem>>, vector<16x8xf32>
    %cst_193 = arith.constant dense<0.000000e+00> : vector<4x8xf32>
    %291 = tpu.matmul %2, %290, %cst_193 {dimension_numbers = #tpu.dot_dimension_numbers<[1], [0], [0], [1], [0, 0, 1, 1], [], []>} : vector<4x16xf32>, vector<16x8xf32>, vector<4x8xf32> -> vector<4x8xf32>
    %c0_194 = arith.constant 0 : index
    %c0_195 = arith.constant 0 : index
    %292 = vector.load %arg30[%c0_194, %c0_195] : memref<1x8xf32, #tpu.memory_space<vmem>>, vector<1x8xf32>
    %293 = vector.broadcast %292 : vector<1x8xf32> to vector<4x8xf32>
    %294 = arith.addf %291, %293 : vector<4x8xf32>
    %295 = arith.addf %289, %294 : vector<4x8xf32>
    %c0_196 = arith.constant 0 : index
    %c0_197 = arith.constant 0 : index
    %c0_198 = arith.constant 0 : index
    %296 = vector.load %arg31[%c0_196, %c0_197, %c0_198] : memref<1x4x8xf32, #tpu.memory_space<vmem>>, vector<1x4x8xf32>
    %297 = vector.shape_cast %296 : vector<1x4x8xf32> to vector<4x8xf32>
    %298 = vector.shape_cast %295 : vector<4x8xf32> to vector<1x4x8xf32>
    tpu.vector_store %arg31[%c0_196, %c0_197, %c0_198], %298 {strides = array<i32>} : memref<1x4x8xf32, #tpu.memory_space<vmem>>, vector<1x4x8xf32>,
    return
  }
  func.func @transform_0(%arg0: i32) -> (i32, i32, i32) {
    %c0_i32 = arith.constant 0 : i32
    %c0_i32_0 = arith.constant 0 : i32
    %c0_i32_1 = arith.constant 0 : i32
    return %arg0, %c0_i32, %c0_i32_0 : i32, i32, i32
  }
  func.func @transform_1(%arg0: i32) -> (i32, i32) {
    %c0_i32 = arith.constant 0 : i32
    %c0_i32_0 = arith.constant 0 : i32
    %c0_i32_1 = arith.constant 0 : i32
    return %c0_i32, %c0_i32_0 : i32, i32
  }
  func.func @transform_2(%arg0: i32) -> (i32, i32) {
    %c0_i32 = arith.constant 0 : i32
    %c0_i32_0 = arith.constant 0 : i32
    %c0_i32_1 = arith.constant 0 : i32
    return %c0_i32, %c0_i32_0 : i32, i32
  }
  func.func @transform_3(%arg0: i32) -> (i32, i32) {
    %c0_i32 = arith.constant 0 : i32
    %c0_i32_0 = arith.constant 0 : i32
    %c0_i32_1 = arith.constant 0 : i32
    return %c0_i32, %c0_i32_0 : i32, i32
  }
  func.func @transform_4(%arg0: i32) -> (i32, i32, i32, i32) {
    %c0_i32 = arith.constant 0 : i32
    %c0_i32_0 = arith.constant 0 : i32
    %c0_i32_1 = arith.constant 0 : i32
    %c0_i32_2 = arith.constant 0 : i32
    %c0_i32_3 = arith.constant 0 : i32
    return %c0_i32, %c0_i32_0, %c0_i32_1, %c0_i32_2 : i32, i32, i32, i32
  }
  func.func @transform_5(%arg0: i32) -> (i32, i32, i32, i32) {
    %c0_i32 = arith.constant 0 : i32
    %c0_i32_0 = arith.constant 0 : i32
    %c0_i32_1 = arith.constant 0 : i32
    %c0_i32_2 = arith.constant 0 : i32
    %c0_i32_3 = arith.constant 0 : i32
    return %c0_i32, %c0_i32_0, %c0_i32_1, %c0_i32_2 : i32, i32, i32, i32
  }
  func.func @transform_6(%arg0: i32) -> (i32, i32, i32, i32) {
    %c0_i32 = arith.constant 0 : i32
    %c0_i32_0 = arith.constant 0 : i32
    %c0_i32_1 = arith.constant 0 : i32
    %c0_i32_2 = arith.constant 0 : i32
    %c0_i32_3 = arith.constant 0 : i32
    return %c0_i32, %c0_i32_0, %c0_i32_1, %c0_i32_2 : i32, i32, i32, i32
  }
  func.func @transform_7(%arg0: i32) -> (i32, i32, i32, i32) {
    %c0_i32 = arith.constant 0 : i32
    %c0_i32_0 = arith.constant 0 : i32
    %c0_i32_1 = arith.constant 0 : i32
    %c0_i32_2 = arith.constant 0 : i32
    %c0_i32_3 = arith.constant 0 : i32
    return %c0_i32, %c0_i32_0, %c0_i32_1, %c0_i32_2 : i32, i32, i32, i32
  }
  func.func @transform_8(%arg0: i32) -> (i32, i32, i32, i32) {
    %c0_i32 = arith.constant 0 : i32
    %c0_i32_0 = arith.constant 0 : i32
    %c0_i32_1 = arith.constant 0 : i32
    %c0_i32_2 = arith.constant 0 : i32
    %c0_i32_3 = arith.constant 0 : i32
    return %c0_i32, %c0_i32_0, %c0_i32_1, %c0_i32_2 : i32, i32, i32, i32
  }
  func.func @transform_9(%arg0: i32) -> (i32, i32, i32, i32) {
    %c0_i32 = arith.constant 0 : i32
    %c0_i32_0 = arith.constant 0 : i32
    %c0_i32_1 = arith.constant 0 : i32
    %c0_i32_2 = arith.constant 0 : i32
    %c0_i32_3 = arith.constant 0 : i32
    return %c0_i32, %c0_i32_0, %c0_i32_1, %c0_i32_2 : i32, i32, i32, i32
  }
  func.func @transform_10(%arg0: i32) -> (i32, i32, i32, i32) {
    %c0_i32 = arith.constant 0 : i32
    %c0_i32_0 = arith.constant 0 : i32
    %c0_i32_1 = arith.constant 0 : i32
    %c0_i32_2 = arith.constant 0 : i32
    %c0_i32_3 = arith.constant 0 : i32
    return %c0_i32, %c0_i32_0, %c0_i32_1, %c0_i32_2 : i32, i32, i32, i32
  }
  func.func @transform_11(%arg0: i32) -> (i32, i32, i32) {
    %c0_i32 = arith.constant 0 : i32
    %c0_i32_0 = arith.constant 0 : i32
    %c0_i32_1 = arith.constant 0 : i32
    %c0_i32_2 = arith.constant 0 : i32
    return %c0_i32, %c0_i32_0, %c0_i32_1 : i32, i32, i32
  }
  func.func @transform_12(%arg0: i32) -> (i32, i32, i32) {
    %c0_i32 = arith.constant 0 : i32
    %c0_i32_0 = arith.constant 0 : i32
    %c0_i32_1 = arith.constant 0 : i32
    %c0_i32_2 = arith.constant 0 : i32
    return %c0_i32, %c0_i32_0, %c0_i32_1 : i32, i32, i32
  }
  func.func @transform_13(%arg0: i32) -> (i32, i32, i32) {
    %c0_i32 = arith.constant 0 : i32
    %c0_i32_0 = arith.constant 0 : i32
    %c0_i32_1 = arith.constant 0 : i32
    %c0_i32_2 = arith.constant 0 : i32
    return %c0_i32, %c0_i32_0, %c0_i32_1 : i32, i32, i32
  }
  func.func @transform_14(%arg0: i32) -> (i32, i32, i32) {
    %c0_i32 = arith.constant 0 : i32
    %c0_i32_0 = arith.constant 0 : i32
    %c0_i32_1 = arith.constant 0 : i32
    %c0_i32_2 = arith.constant 0 : i32
    return %c0_i32, %c0_i32_0, %c0_i32_1 : i32, i32, i32
  }
  func.func @transform_15(%arg0: i32) -> (i32, i32, i32) {
    %c0_i32 = arith.constant 0 : i32
    %c0_i32_0 = arith.constant 0 : i32
    %c0_i32_1 = arith.constant 0 : i32
    %c0_i32_2 = arith.constant 0 : i32
    return %c0_i32, %c0_i32_0, %c0_i32_1 : i32, i32, i32
  }
  func.func @transform_16(%arg0: i32) -> (i32, i32, i32) {
    %c0_i32 = arith.constant 0 : i32
    %c0_i32_0 = arith.constant 0 : i32
    %c0_i32_1 = arith.constant 0 : i32
    %c0_i32_2 = arith.constant 0 : i32
    return %c0_i32, %c0_i32_0, %c0_i32_1 : i32, i32, i32
  }
  func.func @transform_17(%arg0: i32) -> (i32, i32, i32) {
    %c0_i32 = arith.constant 0 : i32
    %c0_i32_0 = arith.constant 0 : i32
    %c0_i32_1 = arith.constant 0 : i32
    %c0_i32_2 = arith.constant 0 : i32
    return %c0_i32, %c0_i32_0, %c0_i32_1 : i32, i32, i32
  }
  func.func @transform_18(%arg0: i32) -> (i32, i32, i32) {
    %c0_i32 = arith.constant 0 : i32
    %c0_i32_0 = arith.constant 0 : i32
    %c0_i32_1 = arith.constant 0 : i32
    %c0_i32_2 = arith.constant 0 : i32
    return %c0_i32, %c0_i32_0, %c0_i32_1 : i32, i32, i32
  }
  func.func @transform_19(%arg0: i32) -> (i32, i32, i32) {
    %c0_i32 = arith.constant 0 : i32
    %c0_i32_0 = arith.constant 0 : i32
    %c0_i32_1 = arith.constant 0 : i32
    %c0_i32_2 = arith.constant 0 : i32
    return %c0_i32, %c0_i32_0, %c0_i32_1 : i32, i32, i32
  }
  func.func @transform_20(%arg0: i32) -> (i32, i32) {
    %c0_i32 = arith.constant 0 : i32
    %c0_i32_0 = arith.constant 0 : i32
    %c0_i32_1 = arith.constant 0 : i32
    return %c0_i32, %c0_i32_0 : i32, i32
  }
  func.func @transform_21(%arg0: i32) -> (i32, i32) {
    %c0_i32 = arith.constant 0 : i32
    %c0_i32_0 = arith.constant 0 : i32
    %c0_i32_1 = arith.constant 0 : i32
    return %c0_i32, %c0_i32_0 : i32, i32
  }
  func.func @transform_22(%arg0: i32) -> (i32, i32) {
    %c0_i32 = arith.constant 0 : i32
    %c0_i32_0 = arith.constant 0 : i32
    %c0_i32_1 = arith.constant 0 : i32
    return %c0_i32, %c0_i32_0 : i32, i32
  }
  func.func @transform_23(%arg0: i32) -> (i32, i32) {
    %c0_i32 = arith.constant 0 : i32
    %c0_i32_0 = arith.constant 0 : i32
    %c0_i32_1 = arith.constant 0 : i32
    return %c0_i32, %c0_i32_0 : i32, i32
  }
  func.func @transform_24(%arg0: i32) -> (i32, i32) {
    %c0_i32 = arith.constant 0 : i32
    %c0_i32_0 = arith.constant 0 : i32
    %c0_i32_1 = arith.constant 0 : i32
    return %c0_i32, %c0_i32_0 : i32, i32
  }
  func.func @transform_25(%arg0: i32) -> (i32, i32) {
    %c0_i32 = arith.constant 0 : i32
    %c0_i32_0 = arith.constant 0 : i32
    %c0_i32_1 = arith.constant 0 : i32
    return %c0_i32, %c0_i32_0 : i32, i32
  }
  func.func @transform_26(%arg0: i32) -> (i32, i32) {
    %c0_i32 = arith.constant 0 : i32
    %c0_i32_0 = arith.constant 0 : i32
    %c0_i32_1 = arith.constant 0 : i32
    return %c0_i32, %c0_i32_0 : i32, i32
  }
  func.func @transform_27(%arg0: i32) -> (i32, i32) {
    %c0_i32 = arith.constant 0 : i32
    %c0_i32_0 = arith.constant 0 : i32
    %c0_i32_1 = arith.constant 0 : i32
    return %c0_i32, %c0_i32_0 : i32, i32
  }
  func.func @transform_28(%arg0: i32) -> (i32, i32) {
    %c0_i32 = arith.constant 0 : i32
    %c0_i32_0 = arith.constant 0 : i32
    %c0_i32_1 = arith.constant 0 : i32
    return %c0_i32, %c0_i32_0 : i32, i32
  }
  func.func @transform_29(%arg0: i32) -> (i32, i32) {
    %c0_i32 = arith.constant 0 : i32
    %c0_i32_0 = arith.constant 0 : i32
    %c0_i32_1 = arith.constant 0 : i32
    return %c0_i32, %c0_i32_0 : i32, i32
  }
  func.func @transform_30(%arg0: i32) -> (i32, i32, i32) {
    %c0_i32 = arith.constant 0 : i32
    %c0_i32_0 = arith.constant 0 : i32
    %c0_i32_1 = arith.constant 0 : i32
    return %arg0, %c0_i32, %c0_i32_0 : i32, i32, i32
  }
}

</mosaic_0001>

<bundles_post_ra>
// kernel: basic_transformer_forward.1
= control target key start
LH: loop header
LB: loop body
LE: loop exit
PB: predicated region body
PF: predicated region fallthrough
CT: control target
= control target key end

     0   :  { %s7156_s6 = smov 1   ;;  %s7157_s10 = smov 2   ;;  %s7915_s0 = inlined_call_operand.smem [shape: u32[31], index: -1, kind: input, shape index: {}] }
   0x1   :  { %s7198_s5 = sld [smem:[%s7915_s0]]   ;;  %s7158_s14 = smov 3  }
   0x2   :  { %s7203_s9 = sld [smem:[%s7915_s0 + %s7156_s6]]   ;;  %s7159_s18 = smov 4  }
   0x3   :  { %s7208_s13 = sld [smem:[%s7915_s0 + %s7157_s10]]   ;;  %s7160_s22 = smov 5  }
   0x4   :  { %s7213_s17 = sld [smem:[%s7915_s0 + %s7158_s14]]   ;;  %s7161_s26 = smov 6  }
   0x5   :  { %s7218_s21 = sld [smem:[%s7915_s0 + %s7159_s18]]   ;;  %s7162_s30 = smov 7  }
   0x6   :  { %s7223_s25 = sld [smem:[%s7915_s0 + %s7160_s22]]   ;;  %s7163_s4 = smov 8  }
   0x7   :  { %s7228_s29 = sld [smem:[%s7915_s0 + %s7161_s26]]   ;;  %s7164_s10 = smov 9  }
   0x8   :  { %s7233_s3 = sld [smem:[%s7915_s0 + %s7162_s30]]   ;;  %s7165_s15 = smov 10  }
   0x9   :  { %s7238_s8 = sld [smem:[%s7915_s0 + %s7163_s4]]   ;;  %s7166_s20 = smov 11  }
   0xa   :  { %s7243_s14 = sld [smem:[%s7915_s0 + %s7164_s10]]   ;;  %s7167_s26 = smov 12  }
   0xb   :  { %s7248_s19 = sld [smem:[%s7915_s0 + %s7165_s15]]   ;;  %s7168_s1 = smov 13  }
   0xc   :  { %s7253_s24 = sld [smem:[%s7915_s0 + %s7166_s20]]   ;;  %s7169_s7 = smov 14  }
   0xd   :  { %s7258_s30 = sld [smem:[%s7915_s0 + %s7167_s26]]   ;;  %s7170_s15 = smov 15  }
   0xe   :  { %s7263_s6 = sld [smem:[%s7915_s0 + %s7168_s1]]   ;;  %s7171_s22 = smov 16  }
   0xf   :  { %s7268_s12 = sld [smem:[%s7915_s0 + %s7169_s7]]   ;;  %s7172_s28 = smov 17  }
  0x10   :  { %s7273_s20 = sld [smem:[%s7915_s0 + %s7170_s15]]   ;;  %s7173_s7 = smov 18  }
  0x11   :  { %s7278_s27 = sld [smem:[%s7915_s0 + %s7171_s22]]   ;;  %s7174_s15 = smov 19  }
  0x12   :  { %s7283_s4 = sld [smem:[%s7915_s0 + %s7172_s28]]   ;;  %s7175_s22 = smov 20  }
  0x13   :  { %s7176_s28 = smov 21  }
  0x14   :  { %7926 = sst [smem:[#allocation2_spill]] %s7263_s6 }
  0x15   :  { %s7288_s6 = sld [smem:[%s7915_s0 + %s7173_s7]]   ;;  %s7177_s7 = smov 22  }
  0x16   :  { %7927 = sst [smem:[#allocation3_spill]] %s7273_s20 }
  0x17   :  { %7928 = sst [smem:[#allocation4_spill]] %s7278_s27 }
  0x18   :  { %7929 = sst [smem:[#allocation5_spill]] %s7283_s4 }
  0x19   :  { %s7293_s20 = sld [smem:[%s7915_s0 + %s7174_s15]]   ;;  %s7178_s15 = smov 23  }
  0x1a   :  { %s7298_s27 = sld [smem:[%s7915_s0 + %s7175_s22]]   ;;  %s7179_s22 = smov 24  }
  0x1b   :  { %7930 = sst [smem:[#allocation6_spill]] %s7288_s6 }
  0x1c   :  { %s7303_s4 = sld [smem:[%s7915_s0 + %s7176_s28]]   ;;  %s7180_s28 = smov 25  }
  0x1d   :  { %s7308_s6 = sld [smem:[%s7915_s0 + %s7177_s7]]   ;;  %s7181_s7 = smov 26  }
  0x1f   :  { %7931 = sst [smem:[#allocation7_spill]] %s7293_s20 }
  0x20   :  { %7932 = sst [smem:[#allocation8_spill]] %s7298_s27 }
  0x21   :  { %s7313_s20 = sld [smem:[%s7915_s0 + %s7178_s15]]   ;;  %s7182_s15 = smov 27  }
  0x22   :  { %7933 = sst [smem:[#allocation9_spill]] %s7303_s4 }
  0x23   :  { %7934 = sst [smem:[#allocation10_spill]] %s7308_s6 }
  0x24   :  { %s7318_s27 = sld [smem:[%s7915_s0 + %s7179_s22]]   ;;  %s7183_s22 = smov 28  }
  0x25   :  { %s7323_s4 = sld [smem:[%s7915_s0 + %s7180_s28]]   ;;  %s7184_s28 = smov 29  }
  0x26   :  { %s7328_s6 = sld [smem:[%s7915_s0 + %s7181_s7]]   ;;  %s7185_s7 = smov 30  }
  0x27   :  { %7935 = sst [smem:[#allocation11_spill]] %s7313_s20 }
  0x28   :  { %s7333_s20 = sld [smem:[%s7915_s0 + %s7182_s15]]   ;;  %s7350_s15 = smov 0  }
  0x2a   :  { %7936 = sst [smem:[#allocation12_spill]] %s7318_s27 }
  0x2b   :  { %7937 = sst [smem:[#allocation13_spill]] %s7323_s4 }
  0x2c   :  { %7938 = sst [smem:[#allocation14_spill]] %s7328_s6 }
  0x2d   :  { %s7338_s27 = sld [smem:[%s7915_s0 + %s7183_s22]]  }
  0x2e   :  { %s7343_s4 = sld [smem:[%s7915_s0 + %s7184_s28]]  }
  0x2f   :  { %s7348_s6 = sld [smem:[%s7915_s0 + %s7185_s7]]  }
  0x30 LB: > { %s5940_s16 = sadd.s32 4294967295, %s7154_s15   ;;  %p5944_p0 = scmp.ge.s32.totalorder %s7154_s15, 1  ;;  %s7154_s15 = sphi %s7350_s15, %s71_s15  }
  0x31   : > { %p843_p1 = scmp.lt.s32.totalorder %s7154_s15, 3 }
  0x33   : > { %p844_p2 = pnand %p5944_p0, %p843_p1 }
  0x34   : > { %p920_p3 = scmp.lt.s32.totalorder (!%p844_p2), %s5940_s16, 1  ;;  %v963_v0 = vld [vmem:[%s7203_s9] sm:$0xff] (!%p844_p2)  ;;  %v964_v1 = vld [vmem:[%s7203_s9 + $0x8] sm:$0xff] (!%p844_p2)  ;;  %v7186_v2 = vmov (!%p844_p2), 0.0|0.0   ;;  %vm7187_vm0 = vmmov (!%p844_p2), 0   ;;  %v7188_v4 = vmov (!%p844_p2), 0.0  }
  0x35   : > { %847 = sbr.rel (%p844_p2) target bundleno = 5858 (0x16e2), region = 140  ;;  %6858 = vmatprep.subr.bf16.mxu1 (!%p844_p2), %v7186_v2  ;;  %v6859_v3 = vpack.c.bf16 (!%p844_p2), %v964_v1, %v963_v0  ;;  %6372 = vmatprep.mubr.msk.f32.mxu1 (!%p844_p2), %vm7187_vm0, %v7188_v4  ;;  %v1052_v7 = vld [vmem:[%s7218_s21 + $0x20] sm:$0xff] (!%p844_p2)  ;;  %v1053_v8 = vld [vmem:[%s7218_s21 + $0x28] sm:$0xff] (!%p844_p2)  ;;  %vm972_vm1 = vcmask (!%p844_p2), 130048   ;;  %v1050_v14 = vld [vmem:[%s7218_s21 + $0x10] sm:$0xff] (!%p844_p2)  ;;  %vm1092_vm2 = vcmask (!%p844_p2), 261120  }
  0x36   : > { %6867 = vmatprep.subr.bf16.mxu0 (!%p844_p2), %v7186_v2  ;;  %6394 = vmatprep.mubr.msk.f32.mxu0 (!%p844_p2), %vm7187_vm0, %v7188_v4  ;;  %v6868_v9 = vpack.c.bf16 (!%p844_p2), %v1053_v8, %v1052_v7  ;;  %v1048_v10 = vld [vmem:[%s7218_s21] sm:$0xff] (!%p844_p2)  ;;  %v1049_v11 = vld [vmem:[%s7218_s21 + $0x8] sm:$0xff] (!%p844_p2)  ;;  %v1051_v15 = vld [vmem:[%s7218_s21 + $0x18] sm:$0xff] (!%p844_p2)  ;;  %vm2024_vm3 = vcmask (!%p844_p2), 64512   ;;  %vm2382_vm4 = vcmask (!%p844_p2), 1043456   ;;  %vm2333_vm5 = vcmask (!%p844_p2), 27648  }
  0x37   : > { %6860 = vmatpush3.bf16.msra.mxu1 (!%p844_p2), %v6859_v3  ;;  %v6862_v12 = vpack.c.bf16 (!%p844_p2), %v1049_v11, %v1048_v10  ;;  %v1054_v16 = vld [vmem:[%s7218_s21 + $0x30] sm:$0xff] (!%p844_p2)  ;;  %v6865_v17 = vpack.c.bf16 (!%p844_p2), %v1051_v15, %v1050_v14  ;;  %v1055_v18 = vld [vmem:[%s7218_s21 + $0x38] sm:$0xff] (!%p844_p2)  ;;  %v5948_v20 = vld [vmem:[%s7208_s13] ss:$0 sm:$0xff] (!%p844_p2)  ;;  %vm2378_vm6 = vcmask (!%p844_p2), 31744   ;;  %vm2980_vm7 = vcmask (!%p844_p2), 257024  }
  0x38   : > { %6861 = vmatprep.subr.bf16.mxu1 (!%p844_p2), %v7186_v2  ;;  %6869 = vmatpush3.bf16.msra.mxu0 (!%p844_p2), %v6868_v9  ;;  %v6871_v19 = vpack.c.bf16 (!%p844_p2), %v1055_v18, %v1054_v16  ;;  %v1056_v21 = vld [vmem:[%s7218_s21 + $0x40] sm:$0xff] (!%p844_p2)  ;;  %v1057_v22 = vld [vmem:[%s7218_s21 + $0x48] sm:$0xff] (!%p844_p2)  ;;  %v1058_v31 = vld [vmem:[%s7218_s21 + $0x50] sm:$0xff] (!%p844_p2)  ;;  %s7939_s22 = sld [smem:[#allocation2_spill]] (!%p844_p2)  ;;  %s7940_s23 = sld [smem:[#allocation4_spill]] (!%p844_p2)  ;;  %vm3135_vm8 = vcmask (!%p844_p2), 523264  }
  0x39   : > { %6870 = vmatprep.subr.bf16.mxu0 (!%p844_p2), %v7186_v2  ;;  %v1060_v23 = vld [vmem:[%s7218_s21 + $0x60] sm:$0xff] (!%p844_p2)  ;;  %v1061_v24 = vld [vmem:[%s7218_s21 + $0x68] sm:$0xff] (!%p844_p2)  ;;  %v6874_v29 = vpack.c.bf16 (!%p844_p2), %v1057_v22, %v1056_v21  ;;  %v1059_v33 = vld [vmem:[%s7218_s21 + $0x58] sm:$0xff] (!%p844_p2)  ;;  %s7941_s26 = sld [smem:[#allocation3_spill]] (!%p844_p2)  ;;  %s7942_s28 = sld [smem:[#allocation5_spill]] (!%p844_p2)  ;;  %vm5855_vm10 = vcmask (!%p844_p2), 60416  }
  0x3a   : > { %v1046_v26 = vld [vmem:[%s7213_s17] sm:$0xf] (!%p844_p2)  ;;  %v6880_v30 = vpack.c.bf16 (!%p844_p2), %v1061_v24, %v1060_v23  ;;  %v1062_v34 = vld [vmem:[%s7218_s21 + $0x70] sm:$0xff] (!%p844_p2)  ;;  %v1063_v35 = vld [vmem:[%s7218_s21 + $0x78] sm:$0xff] (!%p844_p2)  ;;  %v6877_v36 = vpack.c.bf16 (!%p844_p2), %v1059_v33, %v1058_v31  ;;  %s7943_s1 = sld [smem:[#allocation6_spill]] (!%p844_p2)  ;;  %s7944_s2 = sld [smem:[#allocation7_spill]] (!%p844_p2) }
  0x3b   : > { %v6883_v37 = vpack.c.bf16 (!%p844_p2), %v1063_v35, %v1062_v34  ;;  %v1376_v38 = vld [vmem:[%s7228_s29] sm:$0xff] (!%p844_p2)  ;;  %v1377_v39 = vld [vmem:[%s7228_s29 + $0x8] sm:$0xff] (!%p844_p2)  ;;  %v1378_v44 = vld [vmem:[%s7228_s29 + $0x10] sm:$0xff] (!%p844_p2)  ;;  %s7945_s7 = sld [smem:[#allocation8_spill]] (!%p844_p2)  ;;  %s7946_s10 = sld [smem:[#allocation10_spill]] (!%p844_p2) }
  0x3c   : > { %s7953_s16 = smov (!%p920_p3, %s5940_s16), 1  ;;  %6872 = vmatpush3.bf16.msra.mxu0 %v6871_v19  ;;  %v1380_v40 = vld [vmem:[%s7228_s29 + $0x20] sm:$0xff]  ;;  %v1381_v41 = vld [vmem:[%s7228_s29 + $0x28] sm:$0xff]  ;;  %v6886_v42 = vpack.c.bf16 %v1377_v39, %v1376_v38  ;;  %v1379_v45 = vld [vmem:[%s7228_s29 + $0x18] sm:$0xff]  ;;  %s7947_s11 = sld [smem:[#allocation9_spill]] }
  0x3d   : > { %s6151_s0 = sshll.u32 %s7953_s16, 4  ;;  %6879 = vmatprep.subr.bf16.mxu0 %v7186_v2  ;;  %v6892_v43 = vpack.c.bf16 %v1381_v41, %v1380_v40  ;;  %v1382_v46 = vld [vmem:[%s7228_s29 + $0x30] sm:$0xff]  ;;  %v1383_v47 = vld [vmem:[%s7228_s29 + $0x38] sm:$0xff]  ;;  %v6889_v48 = vpack.c.bf16 %v1379_v45, %v1378_v44  ;;  %v1384_v50 = vld [vmem:[%s7228_s29 + $0x40] sm:$0xff] }
  0x3e   : > { %s924_s18 = scalar_lea.vmem %s7198_s5, %s6151_s0  ;;  %v6895_v49 = vpack.c.bf16 %v1383_v47, %v1382_v46  ;;  %v1385_v51 = vld [vmem:[%s7228_s29 + $0x48] sm:$0xff]  ;;  %v1388_v52 = vld [vmem:[%s7228_s29 + $0x60] sm:$0xff]  ;;  %v1386_v56 = vld [vmem:[%s7228_s29 + $0x50] sm:$0xff]  ;;  %s7948_s0 = sld [smem:[#allocation13_spill]] }
  0x3f   : > { %v929_v5 = vld [vmem:[%s924_s18] sm:$0xff]  ;;  %v930_v6 = vld [vmem:[%s924_s18 + $0x8] sm:$0xff]  ;;  %v6898_v54 = vpack.c.bf16 %v1385_v51, %v1384_v50  ;;  %v1387_v57 = vld [vmem:[%s7228_s29 + $0x58] sm:$0xff]  ;;  %s7949_s18 = sld [smem:[#allocation11_spill]] }
  0x40   : > { %931 = vxpose.xlu0.b32.start [1/2] (short) (narrow) %v929_v5, 8  ;;  %v1389_v53 = vld [vmem:[%s7228_s29 + $0x68] sm:$0xff]  ;;  %v1390_v58 = vld [vmem:[%s7228_s29 + $0x70] sm:$0xff]  ;;  %v1391_v59 = vld [vmem:[%s7228_s29 + $0x78] sm:$0xff]  ;;  %v6901_v60 = vpack.c.bf16 %v1387_v57, %v1386_v56 }
  0x41   : > { %v6904_v55 = vpack.c.bf16 %v1389_v53, %v1388_v52  ;;  %v6907_v61 = vpack.c.bf16 %v1391_v59, %v1390_v58  ;;  %v1700_v62 = vld [vmem:[%s7238_s8] sm:$0xff]  ;;  %v1701_v63 = vld [vmem:[%s7238_s8 + $0x8] sm:$0xff]  ;;  %v1703_v7 = vld [vmem:[%s7238_s8 + $0x18] sm:$0xff] }
  0x42   : > { %v1704_v0 = vld [vmem:[%s7238_s8 + $0x20] sm:$0xff]  ;;  %v1705_v1 = vld [vmem:[%s7238_s8 + $0x28] sm:$0xff]  ;;  %v6910_v3 = vpack.c.bf16 %v1701_v63, %v1700_v62  ;;  %v1706_v8 = vld [vmem:[%s7238_s8 + $0x30] sm:$0xff] }
  0x43   : > { %v6916_v5 = vpack.c.bf16 %v1705_v1, %v1704_v0  ;;  %v1707_v9 = vld [vmem:[%s7238_s8 + $0x38] sm:$0xff]  ;;  %v1709_v14 = vld [vmem:[%s7238_s8 + $0x48] sm:$0xff]  ;;  %v1712_v15 = vld [vmem:[%s7238_s8 + $0x60] sm:$0xff] }
  0x44   : > { %932 = vxpose.xlu0.b32.end [2/2] (short) (narrow) %v930_v6, 8  ;;  %v1702_v6 = vld [vmem:[%s7238_s8 + $0x10] sm:$0xff]  ;;  %v6919_v11 = vpack.c.bf16 %v1707_v9, %v1706_v8  ;;  %v1713_v16 = vld [vmem:[%s7238_s8 + $0x68] sm:$0xff]  ;;  %v1715_v22 = vld [vmem:[%s7238_s8 + $0x78] sm:$0xff] }
  0x45   : > { %v6913_v10 = vpack.c.bf16 %v1703_v7, %v1702_v6  ;;  %v6928_v18 = vpack.c.bf16 %v1713_v16, %v1712_v15  ;;  %v1710_v19 = vld [vmem:[%s7238_s8 + $0x50] sm:$0xff]  ;;  %v5958_v34 = vld [vmem:[%s7233_s3] ss:$0 sm:$0xff]  ;;  %v5959_v35 = vld [vmem:[%s7233_s3 + $0x1] ss:$0 sm:$0xff] }
  0x46   : > { %v1714_v21 = vld [vmem:[%s7238_s8 + $0x70] sm:$0xff]  ;;  %v5950_v38 = vld [vmem:[%s7223_s25] ss:$0 sm:$0xff]  ;;  %v5951_v39 = vld [vmem:[%s7223_s25 + $0x1] ss:$0 sm:$0xff] }
  0x47   : > { %v6931_v24 = vpack.c.bf16 %v1715_v22, %v1714_v21  ;;  %v5960_v46 = vld [vmem:[%s7233_s3 + $0x2] ss:$0 sm:$0xff]  ;;  %v5961_v47 = vld [vmem:[%s7233_s3 + $0x3] ss:$0 sm:$0xff]  ;;  %v5966_v58 = vld [vmem:[%s7243_s14] ss:$0 sm:$0xff] }
  0x48   : > { %v5952_v50 = vld [vmem:[%s7223_s25 + $0x2] ss:$0 sm:$0xff]  ;;  %v5953_v51 = vld [vmem:[%s7223_s25 + $0x3] ss:$0 sm:$0xff]  ;;  %v5967_v59 = vld [vmem:[%s7243_s14 + $0x1] ss:$0 sm:$0xff] }
  0xc0   : > { %v7376_v13 = vpop.trf.xlu0 }
  0xc1   : > { %6373 = vmatmul.mubr.msk.f32.vlgmr.msra.gmra.mrb[0].mxu1 %vm972_vm1, %v7376_v13 }
  0xc2   : > { %6863 = vmatpush3.bf16.msra.mxu1 %v6862_v12  ;;  %6383 = vmatprep.mubr.msk.f32.mxu1 %vm7187_vm0, %v7188_v4  ;;  %v1708_v12 = vld [vmem:[%s7238_s8 + $0x40] sm:$0xff] }
  0xc3   : > { %6864 = vmatprep.subr.bf16.mxu1 %v7186_v2 }
  0xc6   : > { %6866 = vmatpush3.bf16.msra.mxu1 %v6865_v17  ;;  %v6922_v17 = vpack.c.bf16 %v1709_v14, %v1708_v12 }
  0xc7   : > { %6873 = vmatprep.subr.bf16.mxu1 %v7186_v2 }
 0x194   : > { %v1042_v25 = vpop.f32.mrb[0].mxu1 }
 0x195   : > { %v1043_v27 = vadd.f32 %v5948_v20, %v1042_v25  ;;  %v6374_v28 = vpop.f32.mrb[1].mxu1  ;;  %v1711_v20 = vld [vmem:[%s7238_s8 + $0x58] sm:$0xff] }
 0x196   : > { %v6925_v23 = vpack.c.bf16 %v1711_v20, %v1710_v19 }
 0x197   : > { %v7396_v32 = vadd.f32 %v1046_v26, %v1043_v27 }
 0x199   : > { %6384 = vmatmul.mubr.msk.f32.vlgmr.msra.gmra.mrb[2].mxu1 %vm1092_vm2, %v7396_v32  ;;  %6395 = vmatmul.mubr.msk.f32.vlgmr.msra.gmra.mrb[0].mxu0 %vm1092_vm2, %v7396_v32 }
 0x19a   : > { %6875 = vmatpush3.bf16.msra.mxu1 %v6874_v29  ;;  %6881 = vmatpush3.bf16.msra.mxu0 %v6880_v30 }
 0x19b   : > { %6876 = vmatprep.subr.bf16.mxu1 %v7186_v2  ;;  %6882 = vmatprep.subr.bf16.mxu0 %v7186_v2 }
 0x19c   : > { %6405 = vmatprep.mubr.msk.f32.mxu1 %vm7187_vm0, %v7188_v4  ;;  %6416 = vmatprep.mubr.msk.f32.mxu0 %vm7187_vm0, %v7188_v4 }
 0x19e   : > { %6878 = vmatpush3.bf16.msra.mxu1 %v6877_v36  ;;  %6884 = vmatpush3.bf16.msra.mxu0 %v6883_v37 }
 0x19f   : > { %6885 = vmatprep.subr.bf16.mxu1 %v7186_v2  ;;  %6891 = vmatprep.subr.bf16.mxu0 %v7186_v2 }
 0x1a1   : > { %6406 = vmatmul.mubr.msk.f32.vlgmr.msra.gmra.mrb[4].mxu1 %vm1092_vm2, %v7396_v32  ;;  %6417 = vmatmul.mubr.msk.f32.vlgmr.msra.gmra.mrb[2].mxu0 %vm1092_vm2, %v7396_v32 }
 0x1a2   : > { %6887 = vmatpush3.bf16.msra.mxu1 %v6886_v42  ;;  %6893 = vmatpush3.bf16.msra.mxu0 %v6892_v43 }
 0x1a3   : > { %6888 = vmatprep.subr.bf16.mxu1 %v7186_v2  ;;  %6894 = vmatprep.subr.bf16.mxu0 %v7186_v2 }
 0x1a4   : > { %6427 = vmatprep.mubr.msk.f32.mxu1 %vm7187_vm0, %v7188_v4  ;;  %6438 = vmatprep.mubr.msk.f32.mxu0 %vm7187_vm0, %v7188_v4 }
 0x1a6   : > { %6890 = vmatpush3.bf16.msra.mxu1 %v6889_v48  ;;  %6896 = vmatpush3.bf16.msra.mxu0 %v6895_v49 }
 0x1a7   : > { %6897 = vmatprep.subr.bf16.mxu1 %v7186_v2  ;;  %6903 = vmatprep.subr.bf16.mxu0 %v7186_v2 }
 0x1a9   : > { %6428 = vmatmul.mubr.msk.f32.vlgmr.msra.gmra.mrb[6].mxu1 %vm1092_vm2, %v7396_v32  ;;  %6439 = vmatmul.mubr.msk.f32.vlgmr.msra.gmra.mrb[4].mxu0 %vm1092_vm2, %v7396_v32 }
 0x1aa   : > { %6899 = vmatpush3.bf16.msra.mxu1 %v6898_v54  ;;  %6905 = vmatpush3.bf16.msra.mxu0 %v6904_v55 }
 0x1ab   : > { %6900 = vmatprep.subr.bf16.mxu1 %v7186_v2  ;;  %6906 = vmatprep.subr.bf16.mxu0 %v7186_v2 }
 0x1ac   : > { %6449 = vmatprep.mubr.msk.f32.mxu1 %vm7187_vm0, %v7188_v4  ;;  %6460 = vmatprep.mubr.msk.f32.mxu0 %vm7187_vm0, %v7188_v4 }
 0x1ae   : > { %6902 = vmatpush3.bf16.msra.mxu1 %v6901_v60  ;;  %6908 = vmatpush3.bf16.msra.mxu0 %v6907_v61 }
 0x1af   : > { %6909 = vmatprep.subr.bf16.mxu1 %v7186_v2  ;;  %6915 = vmatprep.subr.bf16.mxu0 %v7186_v2 }
 0x1b1   : > { %6450 = vmatmul.mubr.msk.f32.vlgmr.msra.gmra.mrb[8].mxu1 %vm1092_vm2, %v7396_v32  ;;  %6461 = vmatmul.mubr.msk.f32.vlgmr.msra.gmra.mrb[6].mxu0 %vm1092_vm2, %v7396_v32 }
 0x1b2   : > { %6911 = vmatpush3.bf16.msra.mxu1 %v6910_v3  ;;  %6917 = vmatpush3.bf16.msra.mxu0 %v6916_v5 }
 0x1b3   : > { %6912 = vmatprep.subr.bf16.mxu1 %v7186_v2  ;;  %6918 = vmatprep.subr.bf16.mxu0 %v7186_v2 }
 0x1b4   : > { %6471 = vmatprep.mubr.msk.f32.mxu1 %vm7187_vm0, %v7188_v4  ;;  %6482 = vmatprep.mubr.msk.f32.mxu0 %vm7187_vm0, %v7188_v4 }
 0x1b6   : > { %6914 = vmatpush3.bf16.msra.mxu1 %v6913_v10  ;;  %6920 = vmatpush3.bf16.msra.mxu0 %v6919_v11 }
 0x1b7   : > { %6921 = vmatprep.subr.bf16.mxu1 %v7186_v2  ;;  %6927 = vmatprep.subr.bf16.mxu0 %v7186_v2 }
 0x1b9   : > { %6472 = vmatmul.mubr.msk.f32.vlgmr.msra.gmra.mrb[10].mxu1 %vm1092_vm2, %v7396_v32  ;;  %6483 = vmatmul.mubr.msk.f32.vlgmr.msra.gmra.mrb[8].mxu0 %vm1092_vm2, %v7396_v32 }
 0x1ba   : > { %6923 = vmatpush3.bf16.msra.mxu1 %v6922_v17  ;;  %6929 = vmatpush3.bf16.msra.mxu0 %v6928_v18 }
 0x1bb   : > { %6924 = vmatprep.subr.bf16.mxu1 %v7186_v2  ;;  %6930 = vmatprep.subr.bf16.mxu0 %v7186_v2 }
 0x1bc   : > { %6493 = vmatprep.mubr.msk.f32.mxu1 %vm7187_vm0, %v7188_v4  ;;  %6504 = vmatprep.mubr.msk.f32.mxu0 %vm7187_vm0, %v7188_v4 }
 0x1be   : > { %6926 = vmatpush3.bf16.msra.mxu1 %v6925_v23  ;;  %6932 = vmatpush3.bf16.msra.mxu0 %v6931_v24 }
 0x1bf   : > { %6507 = vmatprep.subr.mxu1 %v7188_v4  ;;  %6512 = vmatprep.subr.mxu0 %v7188_v4 }
 0x1c1   : > { %6494 = vmatmul.mubr.msk.f32.vlgmr.msra.gmra.mrb[12].mxu1 %vm1092_vm2, %v7396_v32  ;;  %6505 = vmatmul.mubr.msk.f32.vlgmr.msra.gmra.mrb[10].mxu0 %vm1092_vm2, %v7396_v32 }
 0x1c2   : > { %6509 = vmatprep.mubr.msk.f32.mxu1 %vm7187_vm0, %v7188_v4  ;;  %6514 = vmatprep.mubr.msk.f32.mxu0 %vm7187_vm0, %v7188_v4 }
 0x26c   : > { %v1162_v25 = vpop.f32.mrb[2].mxu1  ;;  %v1232_v26 = vpop.f32.mrb[0].mxu0 }
 0x26d   : > { %v6385_v27 = vpop.f32.mrb[3].mxu1  ;;  %v6396_v28 = vpop.f32.mrb[1].mxu0  ;;  %v1163_v44 = vadd.f32 %v5950_v38, %v1162_v25  ;;  %v1233_v45 = vadd.f32 %v5951_v39, %v1232_v26 }
 0x274   : > { %v1302_v29 = vpop.f32.mrb[4].mxu1  ;;  %v1372_v30 = vpop.f32.mrb[2].mxu0 }
 0x275   : > { %v6407_v31 = vpop.f32.mrb[5].mxu1  ;;  %v6418_v33 = vpop.f32.mrb[3].mxu0  ;;  %v1303_v56 = vadd.f32 %v5952_v50, %v1302_v29  ;;  %v1373_v57 = vadd.f32 %v5953_v51, %v1372_v30 }
 0x27c   : > { %v1486_v36 = vpop.f32.mrb[6].mxu1  ;;  %v1556_v37 = vpop.f32.mrb[4].mxu0 }
 0x27d   : > { %v1487_v40 = vadd.f32 %v5958_v34, %v1486_v36  ;;  %v1557_v41 = vadd.f32 %v5959_v35, %v1556_v37  ;;  %v6429_v42 = vpop.f32.mrb[7].mxu1  ;;  %v6440_v43 = vpop.f32.mrb[5].mxu0 }
 0x27f   : > { %6508 = vmatpush3.xpose.msk.msra.mxu1 %vm2024_vm3, %v1487_v40  ;;  %6513 = vmatpush3.xpose.msk.msra.mxu0 %vm2024_vm3, %v1557_v41 }
 0x280   : > { %6517 = vmatprep.subr.mxu1 %v7188_v4  ;;  %6522 = vmatprep.subr.mxu0 %v7188_v4 }
 0x282   : > { %6510 = vmatmul.mubr.msk.f32.vlgmr.msra.gmra.mrb[14].mxu1 %vm2024_vm3, %v1163_v44  ;;  %6515 = vmatmul.mubr.msk.f32.vlgmr.msra.gmra.mrb[12].mxu0 %vm2024_vm3, %v1233_v45 }
 0x283   : > { %6519 = vmatprep.mubr.msk.f32.mxu1 %vm7187_vm0, %v7188_v4  ;;  %6524 = vmatprep.mubr.msk.f32.mxu0 %vm7187_vm0, %v7188_v4 }
 0x284   : > { %v1626_v48 = vpop.f32.mrb[8].mxu1  ;;  %v1696_v49 = vpop.f32.mrb[6].mxu0 }
 0x285   : > { %v1627_v52 = vadd.f32 %v5960_v46, %v1626_v48  ;;  %v1697_v53 = vadd.f32 %v5961_v47, %v1696_v49  ;;  %v6451_v54 = vpop.f32.mrb[9].mxu1  ;;  %v6462_v55 = vpop.f32.mrb[7].mxu0  ;;  %v5968_v49 = vld [vmem:[%s7243_s14 + $0x2] ss:$0 sm:$0xff] }
 0x286   : > { %v5969_v54 = vld [vmem:[%s7243_s14 + $0x3] ss:$0 sm:$0xff] }
 0x287   : > { %6518 = vmatpush3.xpose.msk.msra.mxu1 %vm2024_vm3, %v1627_v52  ;;  %6523 = vmatpush3.xpose.msk.msra.mxu0 %vm2024_vm3, %v1697_v53 }
 0x288   : > { %6527 = vmatprep.subr.mxu1 %v7188_v4  ;;  %6532 = vmatprep.subr.mxu0 %v7188_v4 }
 0x28a   : > { %6520 = vmatmul.mubr.msk.f32.vlgmr.msra.gmra.mrb[16].mxu1 %vm2024_vm3, %v1303_v56  ;;  %6525 = vmatmul.mubr.msk.f32.vlgmr.msra.gmra.mrb[14].mxu0 %vm2024_vm3, %v1373_v57 }
 0x28b   : > { %6529 = vmatprep.mubr.msk.f32.mxu1 %vm7187_vm0, %v7188_v4  ;;  %6534 = vmatprep.mubr.msk.f32.mxu0 %vm7187_vm0, %v7188_v4 }
 0x28c   : > { %v1810_v60 = vpop.f32.mrb[10].mxu1  ;;  %v1880_v61 = vpop.f32.mrb[8].mxu0 }
 0x28d   : > { %v1811_v62 = vadd.f32 %v5966_v58, %v1810_v60  ;;  %v1881_v63 = vadd.f32 %v5967_v59, %v1880_v61  ;;  %v6473_v0 = vpop.f32.mrb[11].mxu1  ;;  %v6484_v1 = vpop.f32.mrb[9].mxu0 }
 0x28e   : > { %v2686_v0 = vld [vmem:[%s7248_s19 + $0x10] sm:$0xff] }
 0x28f   : > { %6528 = vmatpush3.msk.msra.mxu1 %vm2382_vm4, %v1811_v62  ;;  %6533 = vmatpush3.msk.msra.mxu0 %vm2382_vm4, %v1881_v63  ;;  %v2684_v62 = vld [vmem:[%s7248_s19] sm:$0xff]  ;;  %v2685_v63 = vld [vmem:[%s7248_s19 + $0x8] sm:$0xff] }
 0x290   : > { %6537 = vmatprep.subr.mxu1 %v7188_v4  ;;  %6542 = vmatprep.subr.mxu0 %v7188_v4 }
 0x294   : > { %v7535_v3 = vpop.f32.mrb[12].mxu1  ;;  %v7537_v5 = vpop.f32.mrb[10].mxu0 }
 0x295   : > { %v6495_v6 = vpop.f32.mrb[13].mxu1  ;;  %v6506_v7 = vpop.f32.mrb[11].mxu0  ;;  %v1951_v52 = vadd.f32 %v5968_v49, %v7535_v3  ;;  %v2021_v57 = vadd.f32 %v5969_v54, %v7537_v5  ;;  %v2687_v5 = vld [vmem:[%s7248_s19 + $0x18] sm:$0xff]  ;;  %v5996_v49 = vld [vmem:[%s7939_s22] ss:$0 sm:$0xff] }
 0x355   : > { %v2097_v8 = vpop.f32.mrb[14].mxu1  ;;  %v2173_v9 = vpop.f32.mrb[12].mxu0 }
 0x356   : > { %v2329_v10 = vmul.f32 0.35355338, %v2097_v8  ;;  %v6511_v11 = vpop.f32.mrb[15].mxu1  ;;  %v6516_v12 = vpop.f32.mrb[13].mxu0  ;;  %v2330_v14 = vmul.f32 0.35355338, %v2173_v9 }
 0x358   : > { %v2334_v15 = vsel %vm2333_vm5, %v2329_v10, -inf  ;;  %v2337_v16 = vsel %vm2333_vm5, %v2330_v14, -inf }
 0x359   : > { %2335 = vmax.xlane.f32.xlu1 %v2334_v15 }
 0x35d   : > { %v2325_v17 = vpop.f32.mrb[14].mxu0  ;;  %2338 = vmax.xlane.f32.xlu1 %v2337_v16  ;;  %v2249_v18 = vpop.f32.mrb[16].mxu1 }
 0x35e   : > { %v2332_v19 = vmul.f32 0.35355338, %v2325_v17  ;;  %v2331_v20 = vmul.f32 0.35355338, %v2249_v18  ;;  %v6521_v21 = vpop.f32.mrb[17].mxu1  ;;  %v6526_v22 = vpop.f32.mrb[15].mxu0 }
 0x360   : > { %v2343_v23 = vsel %vm2333_vm5, %v2332_v19, -inf  ;;  %v2340_v24 = vsel %vm2333_vm5, %v2331_v20, -inf }
 0x361   : > { %2344 = vmax.xlane.f32.xlu1 %v2343_v23  ;;  %2341 = vmax.xlane.f32.xlu0 %v2340_v24 }
 0x3e6   : > { %v2336_v25 = vpop.xlane.xlu1 %2335 }
 0x3e7   : > { %v2346_v26 = vsub.f32 %v2329_v10, %v2336_v25 }
 0x3e9   : > { %v2350_v27 = vmul.f32 1.442695, %v2346_v26  ;;  %v5994_v26 = vld [vmem:[%s7253_s24] ss:$0 sm:$0xff] }
 0x3ea   : > { %v2339_v28 = vpop.xlane.xlu1 %2338 }
 0x3eb   : > { %7104 = vpow2.f32 %v2350_v27  ;;  %v2347_v29 = vsub.f32 %v2330_v14, %v2339_v28 }
 0x3ed   : > { %v2352_v30 = vmul.f32 1.442695, %v2347_v29 }
 0x3ee   : > { %v2345_v31 = vpop.xlane.xlu1 %2344  ;;  %v2342_v33 = vpop.xlane.xlu0 %2341 }
 0x3ef   : > { %7106 = vpow2.f32 %v2352_v30  ;;  %v2349_v34 = vsub.f32 %v2332_v19, %v2345_v31  ;;  %v2348_v35 = vsub.f32 %v2331_v20, %v2342_v33 }
 0x3f1   : > { %v2354_v36 = vmul.f32 1.442695, %v2348_v35  ;;  %v2356_v37 = vmul.f32 1.442695, %v2349_v34 }
 0x3f3   : > { %7108 = vpow2.f32 %v2354_v36 }
 0x3f4   : > { %7110 = vpow2.f32 %v2356_v37 }
 0x3f5   : > { %v7105_v38 = vpop.eup %7104 }
 0x3f6   : > { %v2358_v39 = vsel %vm2333_vm5, %v7105_v38, 0.0 }
 0x3f7   : > { %2359 = vadd.xlane.f32.xlu1 %v2358_v39  ;;  %v3028_v39 = vld [vmem:[%s7268_s12 + $0x8] sm:$0xff] }
 0x3f9   : > { %v7107_v40 = vpop.eup %7106 }
 0x3fa   : > { %v2361_v41 = vsel %vm2333_vm5, %v7107_v40, 0.0 }
 0x3fb   : > { %2362 = vadd.xlane.f32.xlu1 %v2361_v41  ;;  %v3029_v41 = vld [vmem:[%s7268_s12 + $0x10] sm:$0xff] }
 0x3fd   : > { %v7109_v42 = vpop.eup %7108 }
 0x3fe   : > { %v2364_v43 = vsel %vm2333_vm5, %v7109_v42, 0.0  ;;  %v7111_v44 = vpop.eup %7110 }
 0x3ff   : > { %2365 = vadd.xlane.f32.xlu1 %v2364_v43  ;;  %v2367_v45 = vsel %vm2333_vm5, %v7111_v44, 0.0 }
 0x403   : > { %2368 = vadd.xlane.f32.xlu1 %v2367_v45 }
 0x484   : > { %v2360_v46 = vpop.xlane.xlu1 %2359 }
 0x485   : > { %7112 = vrcp.f32 %v2360_v46 }
 0x488   : > { %v2363_v47 = vpop.xlane.xlu1 %2362 }
 0x489   : > { %7114 = vrcp.f32 %v2363_v47  ;;  %v5995_v47 = vld [vmem:[%s7258_s30] ss:$0 sm:$0xff] }
 0x48c   : > { %v2366_v48 = vpop.xlane.xlu1 %2365 }
 0x48d   : > { %7116 = vrcp.f32 %v2366_v48 }
 0x48f   : > { %v7113_v50 = vpop.eup %7112 }
 0x490   : > { %v2374_v51 = vmul.f32 %v7113_v50, %v7105_v38  ;;  %v2369_v53 = vpop.xlane.xlu1 %2368  ;;  %v3027_v38 = vld [vmem:[%s7268_s12] sm:$0xff] }
 0x491   : > { %7118 = vrcp.f32 %v2369_v53  ;;  %v3121_v53 = vld [vmem:[%s7940_s23 + $0x8] sm:$0xff] }
 0x492   : > { %6530 = vmatmul.mubr.msk.f32.vlgmr.msra.gmra.mrb[18].mxu1 %vm2378_vm6, %v2374_v51 }
 0x493   : > { %v7115_v55 = vpop.eup %7114  ;;  %6538 = vmatpush3.msk.msra.mxu1 %vm2382_vm4, %v1951_v52  ;;  %6539 = vmatprep.mubr.msk.f32.mxu1 %vm7187_vm0, %v7188_v4  ;;  %v3120_v52 = vld [vmem:[%s7940_s23] sm:$0xff] }
 0x494   : > { %v2375_v56 = vmul.f32 %v7115_v55, %v7107_v40  ;;  %6547 = vmatprep.subr.mxu1 %v7188_v4  ;;  %v6934_v40 = vpack.c.bf16 %v3028_v39, %v3027_v38  ;;  %v6940_v54 = vpack.c.bf16 %v3121_v53, %v3120_v52  ;;  %v3122_v55 = vld [vmem:[%s7940_s23 + $0x10] sm:$0xff]  ;;  %v6014_v38 = vld [vmem:[%s7218_s21 + $0xd8] sm:$0xff] }
 0x495   : > { %v6009_v53 = vld [vmem:[%s7218_s21 + $0xb0] sm:$0xff] }
 0x496   : > { %6535 = vmatmul.mubr.msk.f32.vlgmr.msra.gmra.mrb[16].mxu0 %vm2378_vm6, %v2375_v56  ;;  %v3123_v56 = vld [vmem:[%s7940_s23 + $0x18] sm:$0xff] }
 0x497   : > { %6543 = vmatpush3.msk.msra.mxu0 %vm2382_vm4, %v2021_v57  ;;  %6544 = vmatprep.mubr.msk.f32.mxu0 %vm7187_vm0, %v7188_v4  ;;  %v7117_v58 = vpop.eup %7116  ;;  %v6943_v57 = vpack.c.bf16 %v3123_v56, %v3122_v55  ;;  %v6010_v55 = vld [vmem:[%s7218_s21 + $0xb8] sm:$0xff]  ;;  %v6033_v56 = vld [vmem:[%s7228_s29 + $0x90] sm:$0xff] }
 0x498   : > { %6552 = vmatprep.subr.mxu0 %v7188_v4  ;;  %v2376_v59 = vmul.f32 %v7117_v58, %v7109_v42  ;;  %v3124_v58 = vld [vmem:[%s7940_s23 + $0x20] sm:$0xff] }
 0x49a   : > { %6540 = vmatmul.mubr.msk.f32.vlgmr.msra.gmra.mrb[20].mxu1 %vm2378_vm6, %v2376_v59  ;;  %v3125_v59 = vld [vmem:[%s7940_s23 + $0x28] sm:$0xff] }
 0x49b   : > { %v7119_v60 = vpop.eup %7118  ;;  %6549 = vmatprep.mubr.msk.f32.mxu1 %vm7187_vm0, %v7188_v4  ;;  %6548 = vmatpush3.msra.mxu1 %v2684_v62  ;;  %v3127_v62 = vld [vmem:[%s7940_s23 + $0x38] sm:$0xff] }
 0x49c   : > { %v2377_v61 = vmul.f32 %v7119_v60, %v7111_v44  ;;  %6557 = vmatprep.subr.mxu1 %v7188_v4  ;;  %v6946_v60 = vpack.c.bf16 %v3125_v59, %v3124_v58  ;;  %v6961_v58 = vpack.c.bf16 %v6010_v55, %v6009_v53  ;;  %v6023_v55 = vld [vmem:[%s7223_s25 + $0x4] ss:$0 sm:$0xff] }
 0x49e   : > { %6545 = vmatmul.mubr.msk.f32.vlgmr.msra.gmra.mrb[18].mxu0 %vm2378_vm6, %v2377_v61  ;;  %v3126_v61 = vld [vmem:[%s7940_s23 + $0x30] sm:$0xff] }
 0x49f   : > { %6554 = vmatprep.mubr.msk.f32.mxu0 %vm7187_vm0, %v7188_v4  ;;  %6553 = vmatpush3.msra.mxu0 %v2685_v63  ;;  %v6949_v63 = vpack.c.bf16 %v3127_v62, %v3126_v61  ;;  %v6016_v61 = vld [vmem:[%s7218_s21 + $0xe8] sm:$0xff]  ;;  %v6039_v62 = vld [vmem:[%s7228_s29 + $0xc0] sm:$0xff] }
 0x4a0   : > { %6562 = vmatprep.subr.mxu0 %v7188_v4 }
 0x565   : > { %v2452_v1 = vpop.f32.mrb[18].mxu1 }
 0x566   : > { %v6531_v3 = vpop.f32.mrb[19].mxu1  ;;  %6550 = vmatmul.mubr.msk.f32.vlgmr.msra.gmra.mrb[22].mxu1 %vm2024_vm3, %v2452_v1 }
 0x567   : > { %6558 = vmatpush3.msra.mxu1 %v2686_v0  ;;  %6559 = vmatprep.mubr.msk.f32.mxu1 %vm7187_vm0, %v7188_v4  ;;  %v5997_v0 = vld [vmem:[%s7941_s26] ss:$0 sm:$0xff] }
 0x568   : > { %6933 = vmatprep.subr.bf16.mxu1 %v7186_v2 }
 0x569   : > { %v2528_v6 = vpop.f32.mrb[16].mxu0 }
 0x56a   : > { %v6536_v7 = vpop.f32.mrb[17].mxu0  ;;  %6555 = vmatmul.mubr.msk.f32.vlgmr.msra.gmra.mrb[20].mxu0 %vm2024_vm3, %v2528_v6 }
 0x56b   : > { %6563 = vmatpush3.msra.mxu0 %v2687_v5  ;;  %6564 = vmatprep.mubr.msk.f32.mxu0 %vm7187_vm0, %v7188_v4 }
 0x56c   : > { %6939 = vmatprep.subr.bf16.mxu0 %v7186_v2 }
 0x56d   : > { %v2604_v8 = vpop.f32.mrb[20].mxu1 }
 0x56e   : > { %v6541_v9 = vpop.f32.mrb[21].mxu1  ;;  %6560 = vmatmul.mubr.msk.f32.vlgmr.msra.gmra.mrb[24].mxu1 %vm2024_vm3, %v2604_v8 }
 0x56f   : > { %6575 = vmatprep.mubr.msk.f32.mxu1 %vm7187_vm0, %v7188_v4  ;;  %6935 = vmatpush3.bf16.msra.mxu1 %v6934_v40 }
 0x570   : > { %6936 = vmatprep.subr.bf16.mxu1 %v7186_v2 }
 0x571   : > { %v2680_v10 = vpop.f32.mrb[18].mxu0 }
 0x572   : > { %v6546_v11 = vpop.f32.mrb[19].mxu0  ;;  %6565 = vmatmul.mubr.msk.f32.vlgmr.msra.gmra.mrb[22].mxu0 %vm2024_vm3, %v2680_v10 }
 0x573   : > { %6594 = vmatprep.mubr.msk.f32.mxu0 %vm7187_vm0, %v7188_v4  ;;  %6941 = vmatpush3.bf16.msra.mxu0 %v6940_v54 }
 0x574   : > { %6942 = vmatprep.subr.bf16.mxu0 %v7186_v2 }
 0x577   : > { %6944 = vmatpush3.bf16.msra.mxu0 %v6943_v57  ;;  %v6034_v57 = vld [vmem:[%s7228_s29 + $0x98] sm:$0xff] }
 0x578   : > { %6945 = vmatprep.subr.bf16.mxu0 %v7186_v2  ;;  %v6979_v59 = vpack.c.bf16 %v6034_v57, %v6033_v56 }
 0x57b   : > { %6947 = vmatpush3.bf16.msra.mxu0 %v6946_v60  ;;  %v6015_v60 = vld [vmem:[%s7218_s21 + $0xe0] sm:$0xff] }
 0x57c   : > { %6948 = vmatprep.subr.bf16.mxu0 %v7186_v2 }
 0x57f   : > { %6950 = vmatpush3.bf16.msra.mxu0 %v6949_v63  ;;  %v6040_v63 = vld [vmem:[%s7228_s29 + $0xc8] sm:$0xff] }
 0x580   : > { %6963 = vmatprep.subr.bf16.mxu0 %v7186_v2 }
 0x639   : > { %v2757_v12 = vpop.f32.mrb[22].mxu1 }
 0x63a   : > { %v6551_v14 = vpop.f32.mrb[23].mxu1  ;;  %v2981_v16 = vsel %vm2980_vm7, %v2757_v12, 0.0 }
 0x63d   : > { %v2830_v15 = vpop.f32.mrb[20].mxu0 }
 0x63e   : > { %v2982_v17 = vsel %vm2980_vm7, %v2830_v15, 0.0  ;;  %v6556_v18 = vpop.f32.mrb[21].mxu0 }
 0x63f   : > { %v2983_v19 = vadd.f32 %v2982_v17, %v2981_v16  ;;  %v5999_v16 = vld [vmem:[%s7942_s28] ss:$0 sm:$0xff] }
 0x641   : > { %v2903_v20 = vpop.f32.mrb[24].mxu1 }
 0x642   : > { %v2984_v21 = vsel %vm2980_vm7, %v2903_v20, 0.0  ;;  %v6561_v22 = vpop.f32.mrb[25].mxu1 }
 0x643   : > { %v2985_v23 = vadd.f32 %v2984_v21, %v2983_v19 }
 0x645   : > { %v2976_v24 = vpop.f32.mrb[22].mxu0 }
 0x646   : > { %v2986_v25 = vsel %vm2980_vm7, %v2976_v24, 0.0  ;;  %v6566_v27 = vpop.f32.mrb[23].mxu0 }
 0x647   : > { %v2987_v28 = vadd.f32 %v2986_v25, %v2985_v23  ;;  %v6003_v27 = vld [vmem:[%s7218_s21 + $0x80] sm:$0xff] }
 0x649   : > { %v2995_v29 = vadd.f32 %v5994_v26, %v2987_v28  ;;  %v6004_v28 = vld [vmem:[%s7218_s21 + $0x88] sm:$0xff] }
 0x64b   : > { %v2996_v30 = vadd.f32 %v2995_v29, %v7396_v32  ;;  %v3030_v32 = vld [vmem:[%s7268_s12 + $0x18] sm:$0xff]  ;;  %v6011_v29 = vld [vmem:[%s7218_s21 + $0xc0] sm:$0xff] }
 0x64c   : > { %v6937_v42 = vpack.c.bf16 %v3030_v32, %v3029_v41 }
 0x64d   : > { %v2999_v31 = vsel %vm2980_vm7, %v2996_v30, 0.0 }
 0x64e   : > { %3000 = vadd.xlane.f32.xlu1 %v2999_v31  ;;  %6938 = vmatpush3.bf16.msra.mxu1 %v6937_v42  ;;  %v6012_v31 = vld [vmem:[%s7218_s21 + $0xc8] sm:$0xff] }
 0x64f   : > { %6951 = vmatprep.subr.bf16.mxu1 %v7186_v2 }
 0x6db   : > { %v3001_v33 = vpop.xlane.xlu1 %3000 }
 0x6dc   : > { %v3003_v34 = vmul.f32 0.03125, %v3001_v33  ;;  %v6964_v33 = vpack.c.bf16 %v6012_v31, %v6011_v29  ;;  %v6045_v29 = vld [vmem:[%s7228_s29 + $0xf0] sm:$0xff] }
 0x6dd   : > { %v6069_v31 = vld [vmem:[%s7238_s8 + $0xd0] sm:$0xff] }
 0x6de   : > { %v3004_v35 = vsub.f32 %v2996_v30, %v3003_v34  ;;  %v6952_v30 = vpack.c.bf16 %v6004_v28, %v6003_v27  ;;  %v6005_v34 = vld [vmem:[%s7218_s21 + $0x90] sm:$0xff] }
 0x6e0   : > { %v3005_v36 = vmul.f32 %v3004_v35, %v3004_v35 }
 0x6e2   : > { %v3006_v37 = vsel %vm2980_vm7, %v3005_v36, 0.0  ;;  %v6013_v36 = vld [vmem:[%s7218_s21 + $0xd0] sm:$0xff] }
 0x6e3   : > { %3007 = vadd.xlane.f32.xlu1 %v3006_v37  ;;  %v6967_v39 = vpack.c.bf16 %v6014_v38, %v6013_v36  ;;  %v6063_v36 = vld [vmem:[%s7238_s8 + $0xa0] sm:$0xff] }
 0x770   : > { %v3008_v43 = vpop.xlane.xlu1 %3007 }
 0x771   : > { %v3009_v44 = vmul.f32 0.03125, %v3008_v43  ;;  %v6001_v43 = vld [vmem:[%s7943_s1] ss:$0 sm:$0xff] }
 0x773   : > { %v3010_v45 = vadd.f32 1e-05, %v3009_v44  ;;  %v6007_v44 = vld [vmem:[%s7218_s21 + $0xa0] sm:$0xff] }
 0x775   : > { %7120 = vrsqrt.f32 %v3010_v45 }
 0x77f   : > { %v7121_v46 = vpop.eup %7120 }
 0x780   : > { %v3012_v48 = vmul.f32 %v7121_v46, %v3004_v35  ;;  %v6006_v35 = vld [vmem:[%s7218_s21 + $0x98] sm:$0xff]  ;;  %v6008_v46 = vld [vmem:[%s7218_s21 + $0xa8] sm:$0xff] }
 0x781   : > { %v6955_v37 = vpack.c.bf16 %v6006_v35, %v6005_v34 }
 0x782   : > { %v3019_v50 = vmul.f32 %v5995_v47, %v3012_v48  ;;  %v6031_v47 = vld [vmem:[%s7228_s29 + $0x80] sm:$0xff]  ;;  %v6032_v48 = vld [vmem:[%s7228_s29 + $0x88] sm:$0xff] }
 0x783   : > { %v6976_v52 = vpack.c.bf16 %v6032_v48, %v6031_v47 }
 0x784   : > { %v3026_v51 = vadd.f32 %v5996_v49, %v3019_v50  ;;  %v6002_v49 = vld [vmem:[%s7944_s2] ss:$0 sm:$0xff] }
 0x786   : > { %6576 = vmatmul.mubr.msk.f32.vlgmr.msra.gmra.mrb[26].mxu1 %vm1092_vm2, %v3026_v51 }
 0x787   : > { %6605 = vmatprep.mubr.msk.f32.mxu1 %vm7187_vm0, %v7188_v4  ;;  %6953 = vmatpush3.bf16.msra.mxu1 %v6952_v30  ;;  %v6046_v30 = vld [vmem:[%s7228_s29 + $0xf8] sm:$0xff] }
 0x788   : > { %6954 = vmatprep.subr.bf16.mxu1 %v7186_v2  ;;  %v6997_v34 = vpack.c.bf16 %v6046_v30, %v6045_v29 }
 0x78b   : > { %6956 = vmatpush3.bf16.msra.mxu1 %v6955_v37  ;;  %v6064_v37 = vld [vmem:[%s7238_s8 + $0xa8] sm:$0xff] }
 0x78c   : > { %6957 = vmatprep.subr.bf16.mxu1 %v7186_v2  ;;  %v7006_v38 = vpack.c.bf16 %v6064_v37, %v6063_v36 }
 0x859   : > { %v3107_v1 = vpop.f32.mrb[26].mxu1 }
 0x85a   : > { %v3108_v3 = vadd.f32 %v5997_v0, %v3107_v1  ;;  %v6577_v5 = vpop.f32.mrb[27].mxu1  ;;  %v6970_v0 = vpack.c.bf16 %v6016_v61, %v6015_v60  ;;  %v6988_v1 = vpack.c.bf16 %v6040_v63, %v6039_v62  ;;  %v6053_v60 = vld [vmem:[%s7233_s3 + $0x6] ss:$0 sm:$0xff] }
 0x85b   : > { %v6018_v5 = vld [vmem:[%s7218_s21 + $0xf8] sm:$0xff]  ;;  %v6025_v63 = vld [vmem:[%s7223_s25 + $0x6] ss:$0 sm:$0xff] }
 0x85c   : > { %v3111_v6 = vmul.f32 %v3108_v3, %v3108_v3 }
 0x85e   : > { %v3112_v7 = vmul.f32 %v3111_v6, %v3108_v3  ;;  %v6041_v6 = vld [vmem:[%s7228_s29 + $0xd0] sm:$0xff] }
 0x860   : > { %v3113_v8 = vmul.f32 0.044715, %v3112_v7  ;;  %v6042_v7 = vld [vmem:[%s7228_s29 + $0xd8] sm:$0xff] }
 0x862   : > { %v3114_v9 = vadd.f32 %v3113_v8, %v3108_v3 }
 0x864   : > { %v3115_v10 = vmul.f32 0.7978846, %v3114_v9  ;;  %v6991_v9 = vpack.c.bf16 %v6042_v7, %v6041_v6  ;;  %v6052_v6 = vld [vmem:[%s7233_s3 + $0x5] ss:$0 sm:$0xff]  ;;  %v6079_v7 = vld [vmem:[%s7243_s14 + $0x4] ss:$0 sm:$0xff] }
 0x866   : > { %7122 = vtanh.f32 %v3115_v10  ;;  %v6035_v10 = vld [vmem:[%s7228_s29 + $0xa0] sm:$0xff] }
 0x870   : > { %v7123_v11 = vpop.eup %7122 }
 0x871   : > { %v3117_v12 = vadd.f32 1.0, %v7123_v11  ;;  %v6036_v11 = vld [vmem:[%s7228_s29 + $0xa8] sm:$0xff] }
 0x873   : > { %v3118_v14 = vmul.f32 0.5, %v3117_v12  ;;  %v6059_v12 = vld [vmem:[%s7238_s8 + $0x80] sm:$0xff] }
 0x875   : > { %v3119_v15 = vmul.f32 %v3118_v14, %v3108_v3  ;;  %v6017_v3 = vld [vmem:[%s7218_s21 + $0xf0] sm:$0xff]  ;;  %v6060_v14 = vld [vmem:[%s7238_s8 + $0x88] sm:$0xff] }
 0x876   : > { %v6973_v8 = vpack.c.bf16 %v6018_v5, %v6017_v3 }
 0x877   : > { %6595 = vmatmul.mubr.msk.f32.vlgmr.msra.gmra.mrb[24].mxu0 %vm3135_vm8, %v3119_v15  ;;  %v6982_v15 = vpack.c.bf16 %v6036_v11, %v6035_v10  ;;  %v6024_v10 = vld [vmem:[%s7223_s25 + $0x5] ss:$0 sm:$0xff] }
 0x878   : > { %6627 = vmatprep.mubr.msk.f32.mxu0 %vm7187_vm0, %v7188_v4  ;;  %6965 = vmatpush3.bf16.msra.mxu0 %v6964_v33  ;;  %v6070_v33 = vld [vmem:[%s7238_s8 + $0xd8] sm:$0xff] }
 0x879   : > { %6966 = vmatprep.subr.bf16.mxu0 %v7186_v2  ;;  %v7015_v35 = vpack.c.bf16 %v6070_v33, %v6069_v31 }
 0x87c   : > { %6968 = vmatpush3.bf16.msra.mxu0 %v6967_v39  ;;  %v6065_v39 = vld [vmem:[%s7238_s8 + $0xb0] sm:$0xff] }
 0x87d   : > { %6975 = vmatprep.subr.bf16.mxu0 %v7186_v2 }
 0x94a   : > { %v3205_v17 = vpop.f32.mrb[24].mxu0 }
 0x94b   : > { %v3206_v18 = vadd.f32 %v5999_v16, %v3205_v17  ;;  %v6596_v19 = vpop.f32.mrb[25].mxu0  ;;  %v7000_v16 = vpack.c.bf16 %v6060_v14, %v6059_v12  ;;  %v6037_v17 = vld [vmem:[%s7228_s29 + $0xb0] sm:$0xff] }
 0x94c   : > { %v6061_v19 = vld [vmem:[%s7238_s8 + $0x90] sm:$0xff] }
 0x94d   : > { %v3209_v20 = vadd.f32 %v3206_v18, %v3026_v51  ;;  %v6958_v51 = vpack.c.bf16 %v6008_v46, %v6007_v44  ;;  %v6038_v18 = vld [vmem:[%s7228_s29 + $0xb8] sm:$0xff]  ;;  %v6073_v44 = vld [vmem:[%s7238_s8 + $0xf0] sm:$0xff] }
 0x94f   : > { %v3212_v21 = vsel %vm2980_vm7, %v3209_v20, 0.0 }
 0x950   : > { %3213 = vadd.xlane.f32.xlu1 %v3212_v21  ;;  %v6985_v21 = vpack.c.bf16 %v6038_v18, %v6037_v17  ;;  %v6054_v17 = vld [vmem:[%s7233_s3 + $0x7] ss:$0 sm:$0xff] }
 0x9dd   : > { %v3214_v22 = vpop.xlane.xlu1 %3213 }
 0x9de   : > { %v3215_v23 = vmul.f32 0.03125, %v3214_v22 }
 0x9e0   : > { %v3216_v24 = vsub.f32 %v3209_v20, %v3215_v23  ;;  %v6062_v20 = vld [vmem:[%s7238_s8 + $0x98] sm:$0xff]  ;;  %v6043_v23 = vld [vmem:[%s7228_s29 + $0xe0] sm:$0xff] }
 0x9e1   : > { %v7003_v22 = vpack.c.bf16 %v6062_v20, %v6061_v19  ;;  %v6026_v20 = vld [vmem:[%s7223_s25 + $0x7] ss:$0 sm:$0xff] }
 0x9e2   : > { %v3217_v25 = vmul.f32 %v3216_v24, %v3216_v24 }
 0x9e4   : > { %v3218_v26 = vsel %vm2980_vm7, %v3217_v25, 0.0  ;;  %v6067_v25 = vld [vmem:[%s7238_s8 + $0xc0] sm:$0xff] }
 0x9e5   : > { %3219 = vadd.xlane.f32.xlu1 %v3218_v26  ;;  %v6068_v26 = vld [vmem:[%s7238_s8 + $0xc8] sm:$0xff] }
 0x9e6   : > { %v7012_v28 = vpack.c.bf16 %v6068_v26, %v6067_v25  ;;  %v6080_v25 = vld [vmem:[%s7243_s14 + $0x5] ss:$0 sm:$0xff] }
 0xa72   : > { %v3220_v40 = vpop.xlane.xlu1 %3219 }
 0xa73   : > { %v3221_v41 = vmul.f32 0.03125, %v3220_v40  ;;  %v6066_v40 = vld [vmem:[%s7238_s8 + $0xb8] sm:$0xff] }
 0xa75   : > { %v3222_v32 = vadd.f32 1e-05, %v3221_v41  ;;  %v7009_v41 = vpack.c.bf16 %v6066_v40, %v6065_v39 }
 0xa77   : > { %7124 = vrsqrt.f32 %v3222_v32  ;;  %v6071_v32 = vld [vmem:[%s7238_s8 + $0xe0] sm:$0xff] }
 0xa81   : > { %v7125_v42 = vpop.eup %7124 }
 0xa82   : > { %v3224_v45 = vmul.f32 %v7125_v42, %v3216_v24  ;;  %v6044_v24 = vld [vmem:[%s7228_s29 + $0xe8] sm:$0xff] }
 0xa83   : > { %v6994_v27 = vpack.c.bf16 %v6044_v24, %v6043_v23  ;;  %v6072_v42 = vld [vmem:[%s7238_s8 + $0xe8] sm:$0xff] }
 0xa84   : > { %v3231_v50 = vmul.f32 %v6001_v43, %v3224_v45  ;;  %v7018_v43 = vpack.c.bf16 %v6072_v42, %v6071_v32  ;;  %v6074_v45 = vld [vmem:[%s7238_s8 + $0xf8] sm:$0xff] }
 0xa85   : > { %v7021_v46 = vpack.c.bf16 %v6074_v45, %v6073_v44 }
 0xa86   : > { %v7644_v54 = vadd.f32 %v6002_v49, %v3231_v50 }
 0xa88   : > { %6606 = vmatmul.mubr.msk.f32.vlgmr.msra.gmra.mrb[28].mxu1 %vm1092_vm2, %v7644_v54  ;;  %6628 = vmatmul.mubr.msk.f32.vlgmr.msra.gmra.mrb[26].mxu0 %vm1092_vm2, %v7644_v54 }
 0xa89   : > { %6959 = vmatpush3.bf16.msra.mxu1 %v6958_v51  ;;  %6977 = vmatpush3.bf16.msra.mxu0 %v6976_v52  ;;  %v6051_v51 = vld [vmem:[%s7233_s3 + $0x4] ss:$0 sm:$0xff] }
 0xa8a   : > { %6960 = vmatprep.subr.bf16.mxu1 %v7186_v2  ;;  %6978 = vmatprep.subr.bf16.mxu0 %v7186_v2 }
 0xa8b   : > { %6616 = vmatprep.mubr.msk.f32.mxu1 %vm7187_vm0, %v7188_v4  ;;  %6649 = vmatprep.mubr.msk.f32.mxu0 %vm7187_vm0, %v7188_v4 }
 0xa8d   : > { %6962 = vmatpush3.bf16.msra.mxu1 %v6961_v58  ;;  %6980 = vmatpush3.bf16.msra.mxu0 %v6979_v59 }
 0xa8e   : > { %6969 = vmatprep.subr.bf16.mxu1 %v7186_v2  ;;  %6987 = vmatprep.subr.bf16.mxu0 %v7186_v2 }
 0xa90   : > { %6617 = vmatmul.mubr.msk.f32.vlgmr.msra.gmra.mrb[30].mxu1 %vm1092_vm2, %v7644_v54  ;;  %6650 = vmatmul.mubr.msk.f32.vlgmr.msra.gmra.mrb[28].mxu0 %vm1092_vm2, %v7644_v54 }
 0xa91   : > { %6971 = vmatpush3.bf16.msra.mxu1 %v6970_v0  ;;  %6989 = vmatpush3.bf16.msra.mxu0 %v6988_v1 }
 0xa92   : > { %6972 = vmatprep.subr.bf16.mxu1 %v7186_v2  ;;  %6990 = vmatprep.subr.bf16.mxu0 %v7186_v2 }
 0xa93   : > { %6638 = vmatprep.mubr.msk.f32.mxu1 %vm7187_vm0, %v7188_v4  ;;  %6671 = vmatprep.mubr.msk.f32.mxu0 %vm7187_vm0, %v7188_v4 }
 0xa95   : > { %6974 = vmatpush3.bf16.msra.mxu1 %v6973_v8  ;;  %6992 = vmatpush3.bf16.msra.mxu0 %v6991_v9 }
 0xa96   : > { %6981 = vmatprep.subr.bf16.mxu1 %v7186_v2  ;;  %6999 = vmatprep.subr.bf16.mxu0 %v7186_v2 }
 0xa98   : > { %6639 = vmatmul.mubr.msk.f32.vlgmr.msra.gmra.mrb[32].mxu1 %vm1092_vm2, %v7644_v54  ;;  %6672 = vmatmul.mubr.msk.f32.vlgmr.msra.gmra.mrb[30].mxu0 %vm1092_vm2, %v7644_v54 }
 0xa99   : > { %6983 = vmatpush3.bf16.msra.mxu1 %v6982_v15  ;;  %7001 = vmatpush3.bf16.msra.mxu0 %v7000_v16 }
 0xa9a   : > { %6984 = vmatprep.subr.bf16.mxu1 %v7186_v2  ;;  %7002 = vmatprep.subr.bf16.mxu0 %v7186_v2 }
 0xa9b   : > { %6660 = vmatprep.mubr.msk.f32.mxu1 %vm7187_vm0, %v7188_v4  ;;  %6693 = vmatprep.mubr.msk.f32.mxu0 %vm7187_vm0, %v7188_v4 }
 0xa9d   : > { %6986 = vmatpush3.bf16.msra.mxu1 %v6985_v21  ;;  %7004 = vmatpush3.bf16.msra.mxu0 %v7003_v22 }
 0xa9e   : > { %6993 = vmatprep.subr.bf16.mxu1 %v7186_v2  ;;  %7011 = vmatprep.subr.bf16.mxu0 %v7186_v2 }
 0xaa0   : > { %6661 = vmatmul.mubr.msk.f32.vlgmr.msra.gmra.mrb[34].mxu1 %vm1092_vm2, %v7644_v54  ;;  %6694 = vmatmul.mubr.msk.f32.vlgmr.msra.gmra.mrb[32].mxu0 %vm1092_vm2, %v7644_v54 }
 0xaa1   : > { %6995 = vmatpush3.bf16.msra.mxu1 %v6994_v27  ;;  %7013 = vmatpush3.bf16.msra.mxu0 %v7012_v28 }
 0xaa2   : > { %6996 = vmatprep.subr.bf16.mxu1 %v7186_v2  ;;  %7014 = vmatprep.subr.bf16.mxu0 %v7186_v2 }
 0xaa3   : > { %6682 = vmatprep.mubr.msk.f32.mxu1 %vm7187_vm0, %v7188_v4  ;;  %6715 = vmatprep.mubr.msk.f32.mxu0 %vm7187_vm0, %v7188_v4 }
 0xaa5   : > { %6998 = vmatpush3.bf16.msra.mxu1 %v6997_v34  ;;  %7016 = vmatpush3.bf16.msra.mxu0 %v7015_v35 }
 0xaa6   : > { %7005 = vmatprep.subr.bf16.mxu1 %v7186_v2  ;;  %6729 = vmatprep.subr.mxu0 %v7188_v4 }
 0xaa8   : > { %6683 = vmatmul.mubr.msk.f32.vlgmr.msra.gmra.mrb[36].mxu1 %vm1092_vm2, %v7644_v54  ;;  %6716 = vmatmul.mubr.msk.f32.vlgmr.msra.gmra.mrb[34].mxu0 %vm1092_vm2, %v7644_v54 }
 0xaa9   : > { %7007 = vmatpush3.bf16.msra.mxu1 %v7006_v38  ;;  %6704 = vmatprep.mubr.msk.f32.mxu1 %vm7187_vm0, %v7188_v4 }
 0xaaa   : > { %7008 = vmatprep.subr.bf16.mxu1 %v7186_v2  ;;  %6731 = vmatprep.mubr.msk.f32.mxu0 %vm7187_vm0, %v7188_v4 }
 0xaad   : > { %7010 = vmatpush3.bf16.msra.mxu1 %v7009_v41 }
 0xaae   : > { %7017 = vmatprep.subr.bf16.mxu1 %v7186_v2 }
 0xab0   : > { %6705 = vmatmul.mubr.msk.f32.vlgmr.msra.gmra.mrb[38].mxu1 %vm1092_vm2, %v7644_v54 }
 0xab1   : > { %7019 = vmatpush3.bf16.msra.mxu1 %v7018_v43  ;;  %6726 = vmatprep.mubr.msk.f32.mxu1 %vm7187_vm0, %v7188_v4 }
 0xab2   : > { %7020 = vmatprep.subr.bf16.mxu1 %v7186_v2 }
 0xab5   : > { %7022 = vmatpush3.bf16.msra.mxu1 %v7021_v46 }
 0xab6   : > { %6739 = vmatprep.subr.mxu1 %v7188_v4 }
 0xab8   : > { %6727 = vmatmul.mubr.msk.f32.vlgmr.msra.gmra.mrb[40].mxu1 %vm1092_vm2, %v7644_v54 }
 0xab9   : > { %6741 = vmatprep.mubr.msk.f32.mxu1 %vm7187_vm0, %v7188_v4 }
 0xb5b   : > { %v3354_v47 = vpop.f32.mrb[28].mxu1  ;;  %v3494_v48 = vpop.f32.mrb[26].mxu0 }
 0xb5c   : > { %v6607_v49 = vpop.f32.mrb[29].mxu1  ;;  %v6629_v50 = vpop.f32.mrb[27].mxu0  ;;  %v3355_v59 = vadd.f32 %v6023_v55, %v3354_v47  ;;  %v3495_v5 = vadd.f32 %v6025_v63, %v3494_v48 }
 0xb63   : > { %v3424_v52 = vpop.f32.mrb[30].mxu1  ;;  %v3680_v53 = vpop.f32.mrb[28].mxu0 }
 0xb64   : > { %v3681_v56 = vadd.f32 %v6051_v51, %v3680_v53  ;;  %v6618_v57 = vpop.f32.mrb[31].mxu1  ;;  %v6651_v58 = vpop.f32.mrb[29].mxu0  ;;  %v3425_v16 = vadd.f32 %v6024_v10, %v3424_v52 }
 0xb66   : > { %6730 = vmatpush3.xpose.msk.msra.mxu0 %vm2024_vm3, %v3681_v56 }
 0xb67   : > { %6734 = vmatprep.subr.mxu0 %v7188_v4 }
 0xb69   : > { %6732 = vmatmul.mubr.msk.f32.vlgmr.msra.gmra.mrb[36].mxu0 %vm2024_vm3, %v3355_v59 }
 0xb6a   : > { %6736 = vmatprep.mubr.msk.f32.mxu0 %vm7187_vm0, %v7188_v4 }
 0xb6b   : > { %v3564_v61 = vpop.f32.mrb[32].mxu1  ;;  %v3820_v62 = vpop.f32.mrb[30].mxu0 }
 0xb6c   : > { %v3821_v0 = vadd.f32 %v6053_v60, %v3820_v62  ;;  %v6640_v1 = vpop.f32.mrb[33].mxu1  ;;  %v6673_v3 = vpop.f32.mrb[31].mxu0  ;;  %v3565_v24 = vadd.f32 %v6026_v20, %v3564_v61 }
 0xb6e   : > { %6740 = vmatpush3.xpose.msk.msra.mxu1 %vm2024_vm3, %v3821_v0 }
 0xb6f   : > { %6749 = vmatprep.subr.mxu1 %v7188_v4 }
 0xb71   : > { %6742 = vmatmul.mubr.msk.f32.vlgmr.msra.gmra.mrb[42].mxu1 %vm2024_vm3, %v3495_v5 }
 0xb72   : > { %6751 = vmatprep.mubr.msk.f32.mxu1 %vm7187_vm0, %v7188_v4 }
 0xb73   : > { %v3750_v8 = vpop.f32.mrb[34].mxu1  ;;  %v4006_v9 = vpop.f32.mrb[32].mxu0 }
 0xb74   : > { %v3751_v11 = vadd.f32 %v6052_v6, %v3750_v8  ;;  %v4007_v12 = vadd.f32 %v6079_v7, %v4006_v9  ;;  %v6662_v14 = vpop.f32.mrb[35].mxu1  ;;  %v6695_v15 = vpop.f32.mrb[33].mxu0  ;;  %v6081_v7 = vld [vmem:[%s7243_s14 + $0x6] ss:$0 sm:$0xff] }
 0xb75   : > { %v6082_v15 = vld [vmem:[%s7243_s14 + $0x7] ss:$0 sm:$0xff] }
 0xb76   : > { %6735 = vmatpush3.xpose.msk.msra.mxu0 %vm2024_vm3, %v3751_v11  ;;  %6750 = vmatpush3.msk.msra.mxu1 %vm2382_vm4, %v4007_v12 }
 0xb77   : > { %6744 = vmatprep.subr.mxu0 %v7188_v4  ;;  %6759 = vmatprep.subr.mxu1 %v7188_v4 }
 0xb79   : > { %6737 = vmatmul.mubr.msk.f32.vlgmr.msra.gmra.mrb[38].mxu0 %vm2024_vm3, %v3425_v16 }
 0xb7a   : > { %6746 = vmatprep.mubr.msk.f32.mxu0 %vm7187_vm0, %v7188_v4 }
 0xb7b   : > { %v3890_v18 = vpop.f32.mrb[36].mxu1  ;;  %v7774_v19 = vpop.f32.mrb[34].mxu0 }
 0xb7c   : > { %v3891_v21 = vadd.f32 %v6054_v17, %v3890_v18  ;;  %v6684_v22 = vpop.f32.mrb[37].mxu1  ;;  %v6717_v23 = vpop.f32.mrb[35].mxu0  ;;  %v4147_v10 = vadd.f32 %v6081_v7, %v7774_v19  ;;  %v6115_v7 = vld [vmem:[%s7258_s30 + $0x1] ss:$0 sm:$0xff] }
 0xb7d   : > { %v6103_v23 = vld [vmem:[%s7248_s19 + $0x20] sm:$0xff] }
 0xb7e   : > { %6745 = vmatpush3.xpose.msk.msra.mxu0 %vm2024_vm3, %v3891_v21 }
 0xb7f   : > { %6754 = vmatprep.subr.mxu0 %v7188_v4 }
 0xb81   : > { %6747 = vmatmul.mubr.msk.f32.vlgmr.msra.gmra.mrb[40].mxu0 %vm2024_vm3, %v3565_v24  ;;  %v6104_v24 = vld [vmem:[%s7248_s19 + $0x28] sm:$0xff] }
 0xb82   : > { %6756 = vmatprep.mubr.msk.f32.mxu0 %vm7187_vm0, %v7188_v4 }
 0xb83   : > { %v4076_v26 = vpop.f32.mrb[38].mxu1 }
 0xb84   : > { %v4077_v27 = vadd.f32 %v6080_v25, %v4076_v26  ;;  %v6706_v28 = vpop.f32.mrb[39].mxu1  ;;  %v6105_v25 = vld [vmem:[%s7248_s19 + $0x30] sm:$0xff] }
 0xb85   : > { %v6106_v28 = vld [vmem:[%s7248_s19 + $0x38] sm:$0xff] }
 0xb86   : > { %6755 = vmatpush3.msk.msra.mxu0 %vm2382_vm4, %v4077_v27 }
 0xb87   : > { %6764 = vmatprep.subr.mxu0 %v7188_v4 }
 0xb8b   : > { %v7785_v29 = vpop.f32.mrb[40].mxu1 }
 0xb8c   : > { %v6728_v30 = vpop.f32.mrb[41].mxu1  ;;  %v4217_v18 = vadd.f32 %v6082_v15, %v7785_v29 }
 0xc3c   : > { %v4292_v31 = vpop.f32.mrb[36].mxu0 }
 0xc3d   : > { %v4524_v33 = vmul.f32 0.35355338, %v4292_v31  ;;  %v6733_v34 = vpop.f32.mrb[37].mxu0 }
 0xc3f   : > { %v4528_v35 = vsel %vm2333_vm5, %v4524_v33, -inf }
 0xc40   : > { %4529 = vmax.xlane.f32.xlu1 %v4528_v35 }
 0xc44   : > { %v4444_v36 = vpop.f32.mrb[42].mxu1 }
 0xc45   : > { %v6743_v37 = vpop.f32.mrb[43].mxu1  ;;  %v4526_v41 = vmul.f32 0.35355338, %v4444_v36 }
 0xc47   : > { %v4534_v42 = vsel %vm2333_vm5, %v4526_v41, -inf }
 0xc4c   : > { %v4368_v38 = vpop.f32.mrb[38].mxu0 }
 0xc4d   : > { %v4525_v39 = vmul.f32 0.35355338, %v4368_v38  ;;  %v6738_v40 = vpop.f32.mrb[39].mxu0 }
 0xc4f   : > { %v4531_v32 = vsel %vm2333_vm5, %v4525_v39, -inf }
 0xc50   : > { %4532 = vmax.xlane.f32.xlu1 %v4531_v32 }
 0xc54   : > { %v4520_v43 = vpop.f32.mrb[40].mxu0  ;;  %4535 = vmax.xlane.f32.xlu1 %v4534_v42 }
 0xc55   : > { %v4527_v44 = vmul.f32 0.35355338, %v4520_v43  ;;  %v6748_v45 = vpop.f32.mrb[41].mxu0 }
 0xc57   : > { %v4537_v46 = vsel %vm2333_vm5, %v4527_v44, -inf }
 0xc58   : > { %4538 = vmax.xlane.f32.xlu0 %v4537_v46 }
 0xccd   : > { %v4530_v47 = vpop.xlane.xlu1 %4529 }
 0xcce   : > { %v4540_v48 = vsub.f32 %v4524_v33, %v4530_v47 }
 0xcd0   : > { %v4544_v49 = vmul.f32 1.442695, %v4540_v48  ;;  %v6112_v48 = vld [vmem:[%s7253_s24 + $0x1] ss:$0 sm:$0xff] }
 0xcd2   : > { %7126 = vpow2.f32 %v4544_v49 }
 0xcdc   : > { %v7127_v50 = vpop.eup %7126 }
 0xcdd   : > { %v4533_v51 = vpop.xlane.xlu1 %4532  ;;  %v4552_v52 = vsel %vm2333_vm5, %v7127_v50, 0.0 }
 0xcde   : > { %v4541_v53 = vsub.f32 %v4525_v39, %v4533_v51  ;;  %4553 = vadd.xlane.f32.xlu1 %v4552_v52 }
 0xce0   : > { %v4546_v55 = vmul.f32 1.442695, %v4541_v53 }
 0xce1   : > { %v4536_v56 = vpop.xlane.xlu1 %4535 }
 0xce2   : > { %7128 = vpow2.f32 %v4546_v55  ;;  %v4542_v57 = vsub.f32 %v4526_v41, %v4536_v56 }
 0xce4   : > { %v4548_v58 = vmul.f32 1.442695, %v4542_v57 }
 0xce5   : > { %v4539_v59 = vpop.xlane.xlu0 %4538 }
 0xce6   : > { %7130 = vpow2.f32 %v4548_v58  ;;  %v4543_v60 = vsub.f32 %v4527_v44, %v4539_v59 }
 0xce8   : > { %v4550_v61 = vmul.f32 1.442695, %v4543_v60  ;;  %v6117_v60 = vld [vmem:[%s7268_s12 + $0x20] sm:$0xff] }
 0xcea   : > { %7132 = vpow2.f32 %v4550_v61  ;;  %v6118_v61 = vld [vmem:[%s7268_s12 + $0x28] sm:$0xff] }
 0xcec   : > { %v7129_v62 = vpop.eup %7128 }
 0xced   : > { %v4555_v63 = vsel %vm2333_vm5, %v7129_v62, 0.0 }
 0xcee   : > { %4556 = vadd.xlane.f32.xlu0 %v4555_v63  ;;  %v6119_v63 = vld [vmem:[%s7268_s12 + $0x30] sm:$0xff] }
 0xcf0   : > { %v7131_v0 = vpop.eup %7130 }
 0xcf1   : > { %v4558_v1 = vsel %vm2333_vm5, %v7131_v0, 0.0 }
 0xcf2   : > { %4559 = vadd.xlane.f32.xlu1 %v4558_v1 }
 0xcf4   : > { %v7133_v3 = vpop.eup %7132 }
 0xcf5   : > { %v4561_v5 = vsel %vm2333_vm5, %v7133_v3, 0.0 }
 0xcf6   : > { %4562 = vadd.xlane.f32.xlu0 %v4561_v5 }
 0xd6b   : > { %v4554_v6 = vpop.xlane.xlu1 %4553 }
 0xd6c   : > { %7134 = vrcp.f32 %v4554_v6 }
 0xd76   : > { %v7135_v8 = vpop.eup %7134 }
 0xd77   : > { %v4568_v9 = vmul.f32 %v7135_v8, %v7127_v50 }
 0xd79   : > { %6752 = vmatmul.mubr.msk.f32.vlgmr.msra.gmra.mrb[44].mxu1 %vm2378_vm6, %v4568_v9  ;;  %v6116_v9 = vld [vmem:[%s7939_s22 + $0x1] ss:$0 sm:$0xff] }
 0xd7a   : > { %6760 = vmatpush3.msk.msra.mxu1 %vm2382_vm4, %v4147_v10  ;;  %6761 = vmatprep.mubr.msk.f32.mxu1 %vm7187_vm0, %v7188_v4 }
 0xd7b   : > { %v4557_v11 = vpop.xlane.xlu0 %4556  ;;  %6769 = vmatprep.subr.mxu1 %v7188_v4 }
 0xd7c   : > { %7136 = vrcp.f32 %v4557_v11 }
 0xd7f   : > { %v4560_v12 = vpop.xlane.xlu1 %4559 }
 0xd80   : > { %7138 = vrcp.f32 %v4560_v12  ;;  %v6124_v12 = vld [vmem:[%s7940_s23 + $0x40] sm:$0xff] }
 0xd83   : > { %v4563_v14 = vpop.xlane.xlu0 %4562 }
 0xd84   : > { %7140 = vrcp.f32 %v4563_v14  ;;  %v6125_v14 = vld [vmem:[%s7940_s23 + $0x48] sm:$0xff] }
 0xd85   : > { %v7030_v15 = vpack.c.bf16 %v6125_v14, %v6124_v12 }
 0xd86   : > { %v7137_v16 = vpop.eup %7136 }
 0xd87   : > { %v4569_v17 = vmul.f32 %v7137_v16, %v7129_v62  ;;  %v7024_v62 = vpack.c.bf16 %v6118_v61, %v6117_v60  ;;  %v6126_v16 = vld [vmem:[%s7940_s23 + $0x50] sm:$0xff]  ;;  %v6137_v60 = vld [vmem:[%s7943_s1 + $0x1] ss:$0 sm:$0xff]  ;;  %s7950_s1 = sld [smem:[#allocation12_spill]] }
 0xd89   : > { %6757 = vmatmul.mubr.msk.f32.vlgmr.msra.gmra.mrb[42].mxu0 %vm2378_vm6, %v4569_v17  ;;  %v6127_v17 = vld [vmem:[%s7940_s23 + $0x58] sm:$0xff] }
 0xd8a   : > { %v7139_v19 = vpop.eup %7138  ;;  %6765 = vmatpush3.msk.msra.mxu0 %vm2382_vm4, %v4217_v18  ;;  %6766 = vmatprep.mubr.msk.f32.mxu0 %vm7187_vm0, %v7188_v4  ;;  %v7033_v18 = vpack.c.bf16 %v6127_v17, %v6126_v16  ;;  %v7189_v16 = vmov 0   ;;  %v6141_v17 = vld [vmem:[%s7949_s18] ss:$0 sm:$0xff] }
 0xd8b   : > { %v4570_v20 = vmul.f32 %v7139_v19, %v7131_v0  ;;  %6774 = vmatprep.subr.mxu0 %v7188_v4  ;;  %v6120_v0 = vld [vmem:[%s7268_s12 + $0x38] sm:$0xff]  ;;  %v6128_v19 = vld [vmem:[%s7940_s23 + $0x60] sm:$0xff]  ;;  %7102 = vset.pattern.permute.xlu1 %v7189_v16 }
 0xd8c   : > { %7103 = vset.pattern.permute.xlu0 %v7189_v16 }
 0xd8d   : > { %6762 = vmatmul.mubr.msk.f32.vlgmr.msra.gmra.mrb[46].mxu1 %vm2378_vm6, %v4570_v20  ;;  %v6129_v20 = vld [vmem:[%s7940_s23 + $0x68] sm:$0xff] }
 0xd8e   : > { %v7141_v21 = vpop.eup %7140  ;;  %6771 = vmatprep.mubr.msk.f32.mxu1 %vm7187_vm0, %v7188_v4  ;;  %6770 = vmatpush3.msra.mxu1 %v6103_v23  ;;  %v6131_v23 = vld [vmem:[%s7940_s23 + $0x78] sm:$0xff] }
 0xd8f   : > { %v4571_v22 = vmul.f32 %v7141_v21, %v7133_v3  ;;  %6779 = vmatprep.subr.mxu1 %v7188_v4  ;;  %v7036_v21 = vpack.c.bf16 %v6129_v20, %v6128_v19 }
 0xd91   : > { %6767 = vmatmul.mubr.msk.f32.vlgmr.msra.gmra.mrb[44].mxu0 %vm2378_vm6, %v4571_v22  ;;  %v6130_v22 = vld [vmem:[%s7940_s23 + $0x70] sm:$0xff] }
 0xd92   : > { %6776 = vmatprep.mubr.msk.f32.mxu0 %vm7187_vm0, %v7188_v4  ;;  %6775 = vmatpush3.msra.mxu0 %v6104_v24  ;;  %v7039_v24 = vpack.c.bf16 %v6131_v23, %v6130_v22  ;;  %v5775_v23 = vld [vmem:[%s7338_s27] sm:$0xff] }
 0xd93   : > { %6784 = vmatprep.subr.mxu0 %v7188_v4 }
 0xe4c   : > { %v4644_v26 = vpop.f32.mrb[44].mxu1 }
 0xe4d   : > { %v6753_v27 = vpop.f32.mrb[45].mxu1  ;;  %6772 = vmatmul.mubr.msk.f32.vlgmr.msra.gmra.mrb[48].mxu1 %vm2024_vm3, %v4644_v26 }
 0xe4e   : > { %6780 = vmatpush3.msra.mxu1 %v6105_v25  ;;  %6781 = vmatprep.mubr.msk.f32.mxu1 %vm7187_vm0, %v7188_v4  ;;  %v6122_v25 = vld [vmem:[%s7941_s26 + $0x1] ss:$0 sm:$0xff] }
 0xe4f   : > { %7023 = vmatprep.subr.bf16.mxu1 %v7186_v2 }
 0xe5c   : > { %v4720_v29 = vpop.f32.mrb[42].mxu0 }
 0xe5d   : > { %v6758_v30 = vpop.f32.mrb[43].mxu0  ;;  %6777 = vmatmul.mubr.msk.f32.vlgmr.msra.gmra.mrb[46].mxu0 %vm2024_vm3, %v4720_v29 }
 0xe5e   : > { %6785 = vmatpush3.msra.mxu0 %v6106_v28  ;;  %6786 = vmatprep.mubr.msk.f32.mxu0 %vm7187_vm0, %v7188_v4 }
 0xe5f   : > { %7029 = vmatprep.subr.bf16.mxu0 %v7186_v2 }
 0xe60   : > { %v4796_v31 = vpop.f32.mrb[46].mxu1 }
 0xe61   : > { %v6763_v33 = vpop.f32.mrb[47].mxu1  ;;  %6782 = vmatmul.mubr.msk.f32.vlgmr.msra.gmra.mrb[50].mxu1 %vm2024_vm3, %v4796_v31 }
 0xe62   : > { %6797 = vmatprep.mubr.msk.f32.mxu1 %vm7187_vm0, %v7188_v4  ;;  %7025 = vmatpush3.bf16.msra.mxu1 %v7024_v62  ;;  %v5525_v62 = vld [vmem:[%s7946_s10] sm:$0xff] }
 0xe63   : > { %7026 = vmatprep.subr.bf16.mxu1 %v7186_v2 }
 0xe64   : > { %v4872_v34 = vpop.f32.mrb[44].mxu0 }
 0xe65   : > { %v6768_v35 = vpop.f32.mrb[45].mxu0  ;;  %6787 = vmatmul.mubr.msk.f32.vlgmr.msra.gmra.mrb[48].mxu0 %vm2024_vm3, %v4872_v34 }
 0xe66   : > { %6816 = vmatprep.mubr.msk.f32.mxu0 %vm7187_vm0, %v7188_v4  ;;  %7031 = vmatpush3.bf16.msra.mxu0 %v7030_v15  ;;  %v5687_v15 = vld [vmem:[%s7948_s0] sm:$0xf] }
 0xe67   : > { %7032 = vmatprep.subr.bf16.mxu0 %v7186_v2 }
 0xe6a   : > { %7034 = vmatpush3.bf16.msra.mxu0 %v7033_v18 }
 0xe6b   : > { %7035 = vmatprep.subr.bf16.mxu0 %v7186_v2 }
 0xe6e   : > { %7037 = vmatpush3.bf16.msra.mxu0 %v7036_v21  ;;  %v5609_v21 = vld [vmem:[%s7950_s1] sm:$0xf]  ;;  %s5947_s1 = sshll.u32 %s7953_s16, 2 }
 0xe6f   : > { %7038 = vmatprep.subr.bf16.mxu0 %v7186_v2 }
 0xe72   : > { %7040 = vmatpush3.bf16.msra.mxu0 %v7039_v24  ;;  %v5776_v24 = vld [vmem:[%s7338_s27 + $0x8] sm:$0xff] }
 0xe73   : > { %6841 = vmatprep.subr.mxu0 %v7188_v4 }
 0xf20   : > { %v4950_v36 = vpop.f32.mrb[48].mxu1 }
 0xf21   : > { %v6773_v37 = vpop.f32.mrb[49].mxu1  ;;  %v5173_v39 = vsel %vm2980_vm7, %v4950_v36, 0.0 }
 0xf30   : > { %v5023_v38 = vpop.f32.mrb[46].mxu0 }
 0xf31   : > { %v5174_v40 = vsel %vm2980_vm7, %v5023_v38, 0.0  ;;  %v6778_v41 = vpop.f32.mrb[47].mxu0 }
 0xf32   : > { %v5175_v32 = vadd.f32 %v5174_v40, %v5173_v39  ;;  %v6133_v39 = vld [vmem:[%s7942_s28 + $0x1] ss:$0 sm:$0xff] }
 0xf34   : > { %v5096_v42 = vpop.f32.mrb[50].mxu1 }
 0xf35   : > { %v5176_v43 = vsel %vm2980_vm7, %v5096_v42, 0.0  ;;  %v6783_v44 = vpop.f32.mrb[51].mxu1 }
 0xf36   : > { %v5177_v45 = vadd.f32 %v5176_v43, %v5175_v32 }
 0xf38   : > { %v5169_v46 = vpop.f32.mrb[48].mxu0 }
 0xf39   : > { %v5178_v47 = vsel %vm2980_vm7, %v5169_v46, 0.0  ;;  %v6788_v49 = vpop.f32.mrb[49].mxu0 }
 0xf3a   : > { %v5179_v50 = vadd.f32 %v5178_v47, %v5177_v45  ;;  %v5438_v49 = vld [vmem:[%s7945_s7] sm:$0xff] }
 0xf3c   : > { %v5188_v51 = vadd.f32 %v6112_v48, %v5179_v50  ;;  %v5439_v50 = vld [vmem:[%s7945_s7 + $0x8] sm:$0xff] }
 0xf3e   : > { %v5189_v52 = vadd.f32 %v5188_v51, %v7644_v54  ;;  %v7027_v54 = vpack.c.bf16 %v6120_v0, %v6119_v63  ;;  %v7042_v51 = vpack.c.bf16 %v5439_v50, %v5438_v49  ;;  %v5526_v63 = vld [vmem:[%s7946_s10 + $0x8] sm:$0xff]  ;;  %v6138_v0 = vld [vmem:[%s7944_s2 + $0x1] ss:$0 sm:$0xff]  ;;  %s7951_s2 = sld [smem:[#allocation14_spill]] }
 0xf40   : > { %v5194_v53 = vsel %vm2980_vm7, %v5189_v52, 0.0  ;;  %7028 = vmatpush3.bf16.msra.mxu1 %v7027_v54 }
 0xf41   : > { %5195 = vadd.xlane.f32.xlu1 %v5194_v53  ;;  %7041 = vmatprep.subr.bf16.mxu1 %v7186_v2  ;;  %v5441_v53 = vld [vmem:[%s7945_s7 + $0x18] sm:$0xff] }
 0xf44   : > { %v5694_v22 = vld [vmem:[%s7951_s2] sm:$0xff]  ;;  %s928_s2 = scalar_lea.vmem %s7348_s6, %s5947_s1 }
 0xfce   : > { %v5196_v55 = vpop.xlane.xlu1 %5195 }
 0xfcf   : > { %v5197_v56 = vmul.f32 0.03125, %v5196_v55 }
 0xfd1   : > { %v5198_v57 = vsub.f32 %v5189_v52, %v5197_v56  ;;  %v5440_v52 = vld [vmem:[%s7945_s7 + $0x10] sm:$0xff] }
 0xfd2   : > { %v7045_v55 = vpack.c.bf16 %v5441_v53, %v5440_v52 }
 0xfd3   : > { %v5199_v58 = vmul.f32 %v5198_v57, %v5198_v57 }
 0xfd5   : > { %v5200_v59 = vsel %vm2980_vm7, %v5199_v58, 0.0 }
 0xfd6   : > { %5201 = vadd.xlane.f32.xlu0 %v5200_v59 }
0x1063   : > { %v5202_v1 = vpop.xlane.xlu0 %5201 }
0x1064   : > { %v5203_v3 = vmul.f32 0.03125, %v5202_v1  ;;  %v7048_v1 = vpack.c.bf16 %v5526_v63, %v5525_v62 }
0x1066   : > { %v5204_v5 = vadd.f32 1e-05, %v5203_v3 }
0x1068   : > { %7142 = vrsqrt.f32 %v5204_v5  ;;  %v5527_v5 = vld [vmem:[%s7946_s10 + $0x10] sm:$0xff] }
0x1072   : > { %v7143_v6 = vpop.eup %7142 }
0x1073   : > { %v5206_v8 = vmul.f32 %v7143_v6, %v5198_v57  ;;  %v5528_v6 = vld [vmem:[%s7946_s10 + $0x18] sm:$0xff] }
0x1075   : > { %v5213_v10 = vmul.f32 %v6115_v7, %v5206_v8  ;;  %v7051_v7 = vpack.c.bf16 %v5528_v6, %v5527_v5  ;;  %v6139_v8 = vld [vmem:[%s7947_s11] ss:$0 sm:$0xff] }
0x1077   : > { %v5220_v11 = vadd.f32 %v6116_v9, %v5213_v10 }
0x1079   : > { %6798 = vmatmul.mubr.msk.f32.vlgmr.msra.gmra.mrb[52].mxu1 %vm1092_vm2, %v5220_v11 }
0x107a   : > { %6827 = vmatprep.mubr.msk.f32.mxu1 %vm7187_vm0, %v7188_v4  ;;  %7043 = vmatpush3.bf16.msra.mxu1 %v7042_v51 }
0x107b   : > { %7044 = vmatprep.subr.bf16.mxu1 %v7186_v2 }
0x107e   : > { %7046 = vmatpush3.bf16.msra.mxu1 %v7045_v55 }
0x107f   : > { %7047 = vmatprep.subr.bf16.mxu1 %v7186_v2 }
0x114c   : > { %v5303_v26 = vpop.f32.mrb[52].mxu1 }
0x114d   : > { %v5304_v27 = vadd.f32 %v6122_v25, %v5303_v26  ;;  %v6799_v28 = vpop.f32.mrb[53].mxu1 }
0x114f   : > { %v5307_v29 = vmul.f32 %v5304_v27, %v5304_v27 }
0x1151   : > { %v5308_v30 = vmul.f32 %v5307_v29, %v5304_v27  ;;  %v7054_v29 = vpack.c.bf16 %v5776_v24, %v5775_v23 }
0x1153   : > { %v5309_v31 = vmul.f32 0.044715, %v5308_v30 }
0x1155   : > { %v5310_v33 = vadd.f32 %v5309_v31, %v5304_v27  ;;  %v6145_v31 = vld [vmem:[%s7333_s20] ss:$0 sm:$0xff] }
0x1157   : > { %v5311_v34 = vmul.f32 0.7978846, %v5310_v33 }
0x1159   : > { %7144 = vtanh.f32 %v5311_v34 }
0x1163   : > { %v7145_v35 = vpop.eup %7144 }
0x1164   : > { %v5313_v36 = vadd.f32 1.0, %v7145_v35 }
0x1166   : > { %v5314_v37 = vmul.f32 0.5, %v5313_v36 }
0x1168   : > { %v5315_v38 = vmul.f32 %v5314_v37, %v5304_v27 }
0x116a   : > { %6817 = vmatmul.mubr.msk.f32.vlgmr.msra.gmra.mrb[50].mxu0 %vm3135_vm8, %v5315_v38 }
0x116b   : > { %6843 = vmatprep.mubr.msk.f32.mxu0 %vm7187_vm0, %v7188_v4 }
0x123d   : > { %v5402_v40 = vpop.f32.mrb[50].mxu0 }
0x123e   : > { %v5403_v41 = vadd.f32 %v6133_v39, %v5402_v40  ;;  %v6818_v32 = vpop.f32.mrb[51].mxu0 }
0x1240   : > { %v5406_v42 = vadd.f32 %v5403_v41, %v5220_v11 }
0x1242   : > { %v5411_v43 = vsel %vm2980_vm7, %v5406_v42, 0.0 }
0x1243   : > { %5412 = vadd.xlane.f32.xlu1 %v5411_v43 }
0x1254   : > { %5690 = vperm.xlu1 %7102, %v5687_v15  }
0x12d0   : > { %v5413_v44 = vpop.xlane.xlu1 %5412 }
0x12d1   : > { %v5414_v45 = vmul.f32 0.03125, %v5413_v44 }
0x12d3   : > { %v5415_v46 = vsub.f32 %v5406_v42, %v5414_v45 }
0x12d4   : > { %v5691_v26 = vpop.permute.xlu1 %5690 }
0x12d5   : > { %v5416_v47 = vmul.f32 %v5415_v46, %v5415_v46 }
0x12d7   : > { %v5417_v48 = vsel %vm2980_vm7, %v5416_v47, 0.0 }
0x12d8   : > { %5418 = vadd.xlane.f32.xlu0 %v5417_v48 }
0x1365   : > { %v5419_v56 = vpop.xlane.xlu0 %5418 }
0x1366   : > { %v5420_v57 = vmul.f32 0.03125, %v5419_v56 }
0x1368   : > { %v5421_v58 = vadd.f32 1e-05, %v5420_v57 }
0x136a   : > { %7146 = vrsqrt.f32 %v5421_v58 }
0x1374   : > { %v7147_v59 = vpop.eup %7146 }
0x1375   : > { %v5423_v61 = vmul.f32 %v7147_v59, %v5415_v46 }
0x1377   : > { %v5430_v54 = vmul.f32 %v6137_v60, %v5423_v61 }
0x1379   : > { %v5437_v3 = vadd.f32 %v6138_v0, %v5430_v54 }
0x137b   : > { %6828 = vmatmul.mubr.msk.f32.vlgmr.msra.gmra.mrb[54].mxu1 %vm1092_vm2, %v5437_v3 }
0x137c   : > { %7049 = vmatpush3.bf16.msra.mxu1 %v7048_v1  ;;  %6838 = vmatprep.mubr.msk.f32.mxu1 %vm7187_vm0, %v7188_v4 }
0x137d   : > { %7050 = vmatprep.subr.bf16.mxu1 %v7186_v2 }
0x1380   : > { %7052 = vmatpush3.bf16.msra.mxu1 %v7051_v7 }
0x144e   : > { %v5518_v9 = vpop.f32.mrb[54].mxu1 }
0x144f   : > { %v5519_v10 = vadd.f32 %v6139_v8, %v5518_v9  ;;  %v6829_v11 = vpop.f32.mrb[55].mxu1 }
0x1451   : > { %vm5522_vm9 = vcmp.gt.f32.partialorder %v5519_v10, 0.0  ;;  %v5523_v12 = vmul.f32 0.01, %v5519_v10 }
0x1453   : > { %v5524_v14 = vsel %vm5522_vm9, %v5519_v10, %v5523_v12 }
0x1454   : > { %6839 = vmatmul.mubr.msk.f32.vlgmr.msra.gmra.mrb[56].mxu1 %vm1092_vm2, %v5524_v14 }
0x1527   : > { %v5605_v18 = vpop.f32.mrb[56].mxu1 }
0x1528   : > { %v5606_v19 = vadd.f32 %v6141_v17, %v5605_v18  ;;  %v6840_v20 = vpop.f32.mrb[57].mxu1 }
0x152a   : > { %6842 = vmatpush3.msk.msra.mxu0 %vm2382_vm4, %v5606_v19 }
0x152b   : > { %6844 = vmatmul.mubr.msk.f32.vlgmr.msra.gmra.mrb[52].mxu0 %vm2378_vm6, %v5609_v21  ;;  %6846 = vmatprep.subr.mxu0 %v7188_v4 }
0x152c   : > { %6848 = vmatprep.mubr.msk.f32.mxu0 %vm7187_vm0, %v7188_v4  ;;  %6847 = vmatpush3.msra.mxu0 %v5694_v22 }
0x152d   : > { %7053 = vmatprep.subr.bf16.mxu0 %v7186_v2  ;;  %v6147_v2 = vld [vmem:[%s7343_s4] ss:$0 sm:$0xff] }
0x152e   : > { %v7056_v33 = vadd.f32 %v6147_v2, %v6145_v31 }
0x15fe   : > { %v5682_v25 = vpop.f32.mrb[52].mxu0 }
0x15ff   : > { %v5686_v27 = vadd.f32 %v5682_v25, %v5606_v19  ;;  %v6845_v28 = vpop.f32.mrb[53].mxu0 }
0x1601   : > { %v5693_v30 = vadd.f32 %v5691_v26, %v5686_v27 }
0x1603   : > { %6849 = vmatmul.mubr.msk.f32.vlgmr.msra.gmra.mrb[54].mxu0 %vm2024_vm3, %v5693_v30 }
0x1604   : > { %7055 = vmatpush3.bf16.msra.mxu0 %v7054_v29  ;;  %6855 = vmatprep.mubr.msk.f32.mxu0 %vm7187_vm0, %v7188_v4 }
0x160b   : > { %6856 = vmatmul.mubr.msk.f32.vlgmr.msra.gmra.mrb[54].mxu0 %vm972_vm1, %v7376_v13 }
0x16de   : > { %v5850_v34 = vpop.f32.mrb[54].mxu0 }
0x16df   : > { %v7057_v35 = vadd.f32 %v7056_v33, %v5850_v34  ;;  %v6857_v36 = vpop.f32.mrb[55].mxu0 }
0x16e1   : > { %5856 = vst.msk [vmem:[%s928_s2] sm:$0xf] %vm5855_vm10, %v7057_v35 }
0x16e2 PF: > { %s71_s15 = sadd.s32 1, %s7154_s15  }
0x16e3   : > { %p68_p4 = scmp.ge.s32.totalorder %s71_s15, 4  }
0x16e5   :  { %70 = sbr.rel (!%p68_p4) target bundleno = 48 (0x30), region = 216 }

</bundles_post_ra>
